<compile_context>
chip_gen: v7x
topology: tpu7x:2x2x1
jax: 0.10.0
libtpu: 0.0.40
codegen_flags: <defaults>
</compile_context>

<pallas_src>
import math

import jax
import jax.numpy as jnp
from jax.experimental import pallas as pl
from jax.experimental.pallas import tpu as pltpu


def lstm_cell_kernel(h_ref, c_ref, w_ref, b_ref,
                     hy_ref, cy_ref, in_ref, f_ref, o_ref, ct_ref):
    """One grid step processes a (bb, tt, H) tile of hidden rows.

    h_ref : (bb, tt, H)  hidden-state rows
    c_ref : (bb, 1, H)   cell-state rows (broadcast over tt here)
    w_ref : (H, 4H)      weight_hh_l transposed (grid-invariant)
    b_ref : (1, 4H)      bias_hh_l (grid-invariant)
    outputs: six (bb, tt, H) tiles -> hy, cy, ingate, forgetgate, outgate, c_tilde
    """
    bb, tt, H = h_ref.shape
    rows = bb * tt
    # Flatten (bb, tt) -> rows: layout-free because tt is sublane-aligned
    # (or bb == 1).  One MXU matmul per block, f32 accumulation.
    h = h_ref[...].reshape(rows, H).astype(w_ref.dtype)
    gates = jnp.dot(h, w_ref[...], preferred_element_type=jnp.float32)
    gates = gates + b_ref[...]

    def sig(x):
        # sigmoid(x) == 0.5*(tanh(x/2)+1): one EUP op instead of exp+div.
        return 0.5 * jnp.tanh(0.5 * x) + 0.5

    # H is a multiple of 128 in practice (config H=768), so these lane-dim
    # slices are free (no cross-lane shuffles).
    ingate     = sig(gates[:, 0 * H:1 * H]).reshape(bb, tt, H)
    forgetgate = sig(gates[:, 1 * H:2 * H]).reshape(bb, tt, H)
    c_tilde    = sig(gates[:, 2 * H:3 * H]).reshape(bb, tt, H)  # config uses sigmoid here (intentional)
    outgate    = sig(gates[:, 3 * H:4 * H]).reshape(bb, tt, H)

    c = c_ref[...].astype(jnp.float32)               # (bb, 1, H) -> broadcasts over tt
    cy = forgetgate * c + ingate * c_tilde
    hy = outgate * jnp.tanh(cy)

    hy_ref[...] = hy.astype(hy_ref.dtype)
    cy_ref[...] = cy.astype(cy_ref.dtype)
    in_ref[...] = ingate.astype(in_ref.dtype)
    f_ref[...]  = forgetgate.astype(f_ref.dtype)
    o_ref[...]  = outgate.astype(o_ref.dtype)
    ct_ref[...] = c_tilde.astype(ct_ref.dtype)


def _vmem_budget_bytes():
    """Generation-aware VMEM budget (~75% of physical, capped)."""
    try:
        phys = pltpu.get_tpu_info().vmem_capacity_bytes
    except Exception:
        phys = 64 << 20            # conservative (v7x-sized) fallback
    return int(min(phys * 3 // 4, 100 << 20))   # ~48 MiB v7x, ~96 MiB v5e/v6e


def _pick_tiles(B, T, H, in_bytes, out_bytes, mm_bytes, budget):
    """Choose (batch_tile, time_tile, needs_pad) so the working set fits VMEM.

    Prefers tiles that divide T exactly (no HBM pad/slice round-trip) and are
    sublane-aligned when they are not the full time extent.
    """
    w_bytes = H * 4 * H * mm_bytes                 # single-buffered weight
    # Per processed row: double-buffered input stream + 6 double-buffered
    # output streams + (row, 4H) f32 gates intermediate + ~6 f32 temporaries.
    per_row = H * (2 * in_bytes + 12 * out_bytes + 16 + 24)
    rows_cap = max(8, (budget - w_bytes - (1 << 20)) // per_row)
    align = 16 if in_bytes == 2 else 8             # bf16 packs 2 rows/sublane

    needs_pad = False
    if B * T <= rows_cap and (B == 1 or T % align == 0):
        bb, tt = B, T                              # whole problem in one block
    else:
        bb = 1
        if T <= rows_cap:
            tt = T                                 # full time extent per batch
        else:
            tt = 0
            d = (rows_cap // align) * align
            while d >= align:                      # largest aligned divisor of T
                if T % d == 0:
                    tt = d
                    break
                d -= align
            if tt == 0:                            # awkward T: padded tail fallback
                tt = max(align, (min(rows_cap, T) // align) * align)
                needs_pad = True

    # Prefer >= 2 grid steps (v7x has 2 TensorCores) when splitting is free.
    steps = (B // bb) * pl.cdiv(T, tt)
    if (not needs_pad) and steps == 1 and T % 2 == 0 and (T // 2) % align == 0:
        tt = T // 2
    return bb, tt, needs_pad


def lstm_cell_forward(hidden_state, cell_state, weight_hh, bias_hh, *,
                      matmul_dtype=jnp.float32, out_dtype=None):
    """Pallas implementation of LSTMCell.forward.

    hidden_state: (B, T, H) float32 or bfloat16
    cell_state:   (B, H)
    weight_hh:    (4H, H)
    bias_hh:      (4H,)
    matmul_dtype: dtype for the MXU operands (pass jnp.bfloat16 on v5e /
                  large H; changes numerics by ~1e-3 rel).
    out_dtype:    dtype of the six outputs (pass jnp.bfloat16 to halve the
                  dominant HBM write traffic if downstream allows).
    Returns dict matching the PyTorch module's output keys.
    """
    B, T, H = hidden_state.shape
    if hidden_state.dtype not in (jnp.float32, jnp.bfloat16):
        hidden_state = hidden_state.astype(jnp.float32)   # no f64 on TPU
    in_dtype = hidden_state.dtype
    out_dtype = jnp.dtype(out_dtype) if out_dtype is not None else jnp.dtype(in_dtype)
    matmul_dtype = jnp.dtype(matmul_dtype)

    in_b, out_b, mm_b = (jnp.dtype(in_dtype).itemsize, out_dtype.itemsize,
                         matmul_dtype.itemsize)
    budget = _vmem_budget_bytes()
    bb, tt, needs_pad = _pick_tiles(B, T, H, in_b, out_b, mm_b, budget)

    Tp = T
    if needs_pad:
        # Rare fallback: T has no aligned divisor <= the VMEM cap.
        Tp = pl.cdiv(T, tt) * tt
        hidden_state = jnp.pad(hidden_state, ((0, 0), (0, Tp - T), (0, 0)))

    # Keep cell state (B, 1, H); the BlockSpec re-uses the same block for
    # every time tile of a batch (no time-broadcast in HBM).
    c3 = jnp.asarray(cell_state, jnp.float32)[:, None, :]
    w_t = jnp.asarray(weight_hh).astype(matmul_dtype).T          # (H, 4H), one-time
    b2d = jnp.asarray(bias_hh, jnp.float32).reshape(1, 4 * H)

    # VMEM model: single-buffered weight + bias + streamed rows + intermediates.
    per_row = H * (2 * in_b + 12 * out_b + 16 + 24)
    est = H * 4 * H * mm_b + 2 * 4 * H * 4 + bb * tt * per_row
    vmem_limit = int(min(budget, max(est + (8 << 20), 32 << 20)))

    row_spec = pl.BlockSpec((bb, tt, H), lambda b, t: (b, t, 0))
    out_shape = jax.ShapeDtypeStruct((B, Tp, H), out_dtype)
    grid = (B // bb, Tp // tt)

    def build(single_buffer_params):
        const_kwargs = {}
        if single_buffer_params:
            # Grid-invariant blocks: double-buffering buys nothing, only VMEM.
            const_kwargs = dict(pipeline_mode=pl.Buffered(buffer_count=1))
        return pl.pallas_call(
            lstm_cell_kernel,
            out_shape=(out_shape,) * 6,
            grid_spec=pl.GridSpec(
                grid=grid,
                in_specs=[
                    row_spec,                                            # hidden rows
                    pl.BlockSpec((bb, 1, H), lambda b, t: (b, 0, 0)),    # cell rows
                    pl.BlockSpec((H, 4 * H), lambda b, t: (0, 0), **const_kwargs),
                    pl.BlockSpec((1, 4 * H), lambda b, t: (0, 0), **const_kwargs),
                ],
                out_specs=[row_spec] * 6,
            ),
            compiler_params=pltpu.CompilerParams(
                dimension_semantics=("parallel", "parallel"),
                vmem_limit_bytes=vmem_limit,
            ),
        )

    use_single_buffer = hasattr(pl, "Buffered")
    try:
        outs = build(use_single_buffer)(hidden_state, c3, w_t, b2d)
    except Exception:
        if not use_single_buffer:
            raise
        # TODO(synk): pl.Buffered(1) not supported on this jax version; fall
        # back to default double-buffered constant blocks.
        outs = build(False)(hidden_state, c3, w_t, b2d)

    if Tp != T:
        outs = tuple(o[:, :T, :] for o in outs)

    hy, cy, ingate, forgetgate, outgate, c_tilde = outs
    return {
        'hidden': hy,
        'cell': cy,
        'in': ingate,
        'forget': forgetgate,
        'out': outgate,
        'c_tilde': c_tilde,
    }


def lstm_cell_reference(hidden_state, cell_state, weight_hh, bias_hh):
    """Pure-JAX reference mirroring the PyTorch forward."""
    gates = hidden_state @ weight_hh.T + bias_hh
    ingate, forgetgate, c_tilde, outgate = jnp.split(gates, 4, axis=-1)
    ingate = jax.nn.sigmoid(ingate)
    forgetgate = jax.nn.sigmoid(forgetgate)
    c_tilde = jax.nn.sigmoid(c_tilde)
    outgate = jax.nn.sigmoid(outgate)
    cy = forgetgate * cell_state[:, None, :] + ingate * c_tilde
    hy = outgate * jnp.tanh(cy)
    return {'hidden': hy, 'cell': cy, 'in': ingate, 'forget': forgetgate,
            'out': outgate, 'c_tilde': c_tilde}


if __name__ == "__main__":
    # Small shapes consistent with the module: batch=2, seq=8, hidden=128.
    B, T, H = 2, 8, 128
    gate_size = 4 * H
    stdv = 1.0 / math.sqrt(H)

    key = jax.random.PRNGKey(0)
    k_w, k_b, k_h, k_c = jax.random.split(key, 4)

    # Deterministic parameter init matching reset_parameters (uniform +-1/sqrt(H)).
    # TODO(synk): config dtype is torch.float64; TPU Pallas lacks f64, using float32.
    weight_hh = jax.random.uniform(k_w, (gate_size, H), jnp.float32, -stdv, stdv)
    bias_hh = jax.random.uniform(k_b, (gate_size,), jnp.float32, -stdv, stdv)

    hidden_state = jax.random.normal(k_h, (B, T, H), jnp.float32)
    cell_state = jax.random.normal(k_c, (B, H), jnp.float32)

    out = lstm_cell_forward(hidden_state, cell_state, weight_hh, bias_hh)
    jax.block_until_ready(out)

    ref = lstm_cell_reference(hidden_state, cell_state, weight_hh, bias_hh)
    for k in out:
        assert out[k].shape == ref[k].shape, f"shape mismatch in {k}"
        assert jnp.allclose(out[k], ref[k], atol=1e-5, rtol=1e-5), f"mismatch in {k}"

    print("KERNEL_OK")
</pallas_src>

<mosaic_0001>
module attributes {stable_mosaic.version = 11 : i64} {
  func.func @lstm_cell_kernel(%arg0: i32, %arg1: i32, %arg2: memref<2x8x128xf32, #tpu.memory_space<vmem>>, %arg3: memref<2x1x128xf32, #tpu.memory_space<vmem>>, %arg4: memref<128x512xf32, #tpu.memory_space<vmem>>, %arg5: memref<1x512xf32, #tpu.memory_space<vmem>>, %arg6: memref<2x8x128xf32, #tpu.memory_space<vmem>>, %arg7: memref<2x8x128xf32, #tpu.memory_space<vmem>>, %arg8: memref<2x8x128xf32, #tpu.memory_space<vmem>>, %arg9: memref<2x8x128xf32, #tpu.memory_space<vmem>>, %arg10: memref<2x8x128xf32, #tpu.memory_space<vmem>>, %arg11: memref<2x8x128xf32, #tpu.memory_space<vmem>>) attributes {dimension_semantics = [#tpu.dimension_semantics<parallel>, #tpu.dimension_semantics<parallel>], iteration_bounds = array<i64: 1, 1>, scalar_prefetch = 0 : i64, scratch_operands = 0 : i64, tpu.core_type = #tpu.core_type<tc>, window_params = [{transform_indices = @transform_0, window_bounds = array<i64: 2, 8, 128>}, {transform_indices = @transform_1, window_bounds = array<i64: 2, 1, 128>}, {pipeline_mode = #tpu.pipeline_mode<synchronous>, transform_indices = @transform_2, window_bounds = array<i64: 128, 512>}, {pipeline_mode = #tpu.pipeline_mode<synchronous>, transform_indices = @transform_3, window_bounds = array<i64: 1, 512>}, {transform_indices = @transform_4, window_bounds = array<i64: 2, 8, 128>}, {transform_indices = @transform_5, window_bounds = array<i64: 2, 8, 128>}, {transform_indices = @transform_6, window_bounds = array<i64: 2, 8, 128>}, {transform_indices = @transform_7, window_bounds = array<i64: 2, 8, 128>}, {transform_indices = @transform_8, window_bounds = array<i64: 2, 8, 128>}, {transform_indices = @transform_9, window_bounds = array<i64: 2, 8, 128>}]} {
    %c0 = arith.constant 0 : index
    %c0_0 = arith.constant 0 : index
    %c0_1 = arith.constant 0 : index
    %0 = vector.load %arg2[%c0, %c0_0, %c0_1] : memref<2x8x128xf32, #tpu.memory_space<vmem>>, vector<2x8x128xf32>
    %1 = vector.shape_cast %0 : vector<2x8x128xf32> to vector<16x128xf32>
    %c0_2 = arith.constant 0 : index
    %c0_3 = arith.constant 0 : index
    %2 = vector.load %arg4[%c0_2, %c0_3] : memref<128x512xf32, #tpu.memory_space<vmem>>, vector<128x512xf32>
    %cst = arith.constant dense<0.000000e+00> : vector<16x512xf32>
    %3 = tpu.matmul %1, %2, %cst {dimension_numbers = #tpu.dot_dimension_numbers<[1], [0], [0], [1], [0, 0, 1, 1], [], []>} : vector<16x128xf32>, vector<128x512xf32>, vector<16x512xf32> -> vector<16x512xf32>
    %c0_4 = arith.constant 0 : index
    %c0_5 = arith.constant 0 : index
    %4 = vector.load %arg5[%c0_4, %c0_5] : memref<1x512xf32, #tpu.memory_space<vmem>>, vector<1x512xf32>
    %5 = vector.broadcast %4 : vector<1x512xf32> to vector<16x512xf32>
    %6 = arith.addf %3, %5 : vector<16x512xf32>
    %7 = vector.extract_strided_slice %6 {offsets = [0, 0], sizes = [16, 128], strides = [1, 1]} : vector<16x512xf32> to vector<16x128xf32>
    %cst_6 = arith.constant 5.000000e-01 : f32
    %8 = vector.broadcast %cst_6 : f32 to vector<16x128xf32>
    %9 = arith.mulf %8, %7 : vector<16x128xf32>
    %10 = math.tanh %9 : vector<16x128xf32>
    %cst_7 = arith.constant 5.000000e-01 : f32
    %11 = vector.broadcast %cst_7 : f32 to vector<16x128xf32>
    %12 = arith.mulf %11, %10 : vector<16x128xf32>
    %cst_8 = arith.constant 5.000000e-01 : f32
    %13 = vector.broadcast %cst_8 : f32 to vector<16x128xf32>
    %14 = arith.addf %12, %13 : vector<16x128xf32>
    %15 = vector.shape_cast %14 : vector<16x128xf32> to vector<2x8x128xf32>
    %16 = vector.extract_strided_slice %6 {offsets = [0, 128], sizes = [16, 128], strides = [1, 1]} : vector<16x512xf32> to vector<16x128xf32>
    %cst_9 = arith.constant 5.000000e-01 : f32
    %17 = vector.broadcast %cst_9 : f32 to vector<16x128xf32>
    %18 = arith.mulf %17, %16 : vector<16x128xf32>
    %19 = math.tanh %18 : vector<16x128xf32>
    %cst_10 = arith.constant 5.000000e-01 : f32
    %20 = vector.broadcast %cst_10 : f32 to vector<16x128xf32>
    %21 = arith.mulf %20, %19 : vector<16x128xf32>
    %cst_11 = arith.constant 5.000000e-01 : f32
    %22 = vector.broadcast %cst_11 : f32 to vector<16x128xf32>
    %23 = arith.addf %21, %22 : vector<16x128xf32>
    %24 = vector.shape_cast %23 : vector<16x128xf32> to vector<2x8x128xf32>
    %25 = vector.extract_strided_slice %6 {offsets = [0, 256], sizes = [16, 128], strides = [1, 1]} : vector<16x512xf32> to vector<16x128xf32>
    %cst_12 = arith.constant 5.000000e-01 : f32
    %26 = vector.broadcast %cst_12 : f32 to vector<16x128xf32>
    %27 = arith.mulf %26, %25 : vector<16x128xf32>
    %28 = math.tanh %27 : vector<16x128xf32>
    %cst_13 = arith.constant 5.000000e-01 : f32
    %29 = vector.broadcast %cst_13 : f32 to vector<16x128xf32>
    %30 = arith.mulf %29, %28 : vector<16x128xf32>
    %cst_14 = arith.constant 5.000000e-01 : f32
    %31 = vector.broadcast %cst_14 : f32 to vector<16x128xf32>
    %32 = arith.addf %30, %31 : vector<16x128xf32>
    %33 = vector.shape_cast %32 : vector<16x128xf32> to vector<2x8x128xf32>
    %34 = vector.extract_strided_slice %6 {offsets = [0, 384], sizes = [16, 128], strides = [1, 1]} : vector<16x512xf32> to vector<16x128xf32>
    %cst_15 = arith.constant 5.000000e-01 : f32
    %35 = vector.broadcast %cst_15 : f32 to vector<16x128xf32>
    %36 = arith.mulf %35, %34 : vector<16x128xf32>
    %37 = math.tanh %36 : vector<16x128xf32>
    %cst_16 = arith.constant 5.000000e-01 : f32
    %38 = vector.broadcast %cst_16 : f32 to vector<16x128xf32>
    %39 = arith.mulf %38, %37 : vector<16x128xf32>
    %cst_17 = arith.constant 5.000000e-01 : f32
    %40 = vector.broadcast %cst_17 : f32 to vector<16x128xf32>
    %41 = arith.addf %39, %40 : vector<16x128xf32>
    %42 = vector.shape_cast %41 : vector<16x128xf32> to vector<2x8x128xf32>
    %c0_18 = arith.constant 0 : index
    %c0_19 = arith.constant 0 : index
    %c0_20 = arith.constant 0 : index
    %43 = vector.load %arg3[%c0_18, %c0_19, %c0_20] : memref<2x1x128xf32, #tpu.memory_space<vmem>>, vector<2x1x128xf32>
    %44 = vector.broadcast %43 : vector<2x1x128xf32> to vector<2x8x128xf32>
    %45 = arith.mulf %24, %44 : vector<2x8x128xf32>
    %46 = arith.mulf %15, %33 : vector<2x8x128xf32>
    %47 = arith.addf %45, %46 : vector<2x8x128xf32>
    %48 = math.tanh %47 : vector<2x8x128xf32>
    %49 = arith.mulf %42, %48 : vector<2x8x128xf32>
    %c0_21 = arith.constant 0 : index
    %c0_22 = arith.constant 0 : index
    %c0_23 = arith.constant 0 : index
    %50 = vector.load %arg6[%c0_21, %c0_22, %c0_23] : memref<2x8x128xf32, #tpu.memory_space<vmem>>, vector<2x8x128xf32>
    tpu.vector_store %arg6[%c0_21, %c0_22, %c0_23], %49 {strides = array<i32>} : memref<2x8x128xf32, #tpu.memory_space<vmem>>, vector<2x8x128xf32>,
    %c0_24 = arith.constant 0 : index
    %c0_25 = arith.constant 0 : index
    %c0_26 = arith.constant 0 : index
    %51 = vector.load %arg7[%c0_24, %c0_25, %c0_26] : memref<2x8x128xf32, #tpu.memory_space<vmem>>, vector<2x8x128xf32>
    tpu.vector_store %arg7[%c0_24, %c0_25, %c0_26], %47 {strides = array<i32>} : memref<2x8x128xf32, #tpu.memory_space<vmem>>, vector<2x8x128xf32>,
    %c0_27 = arith.constant 0 : index
    %c0_28 = arith.constant 0 : index
    %c0_29 = arith.constant 0 : index
    %52 = vector.load %arg8[%c0_27, %c0_28, %c0_29] : memref<2x8x128xf32, #tpu.memory_space<vmem>>, vector<2x8x128xf32>
    tpu.vector_store %arg8[%c0_27, %c0_28, %c0_29], %15 {strides = array<i32>} : memref<2x8x128xf32, #tpu.memory_space<vmem>>, vector<2x8x128xf32>,
    %c0_30 = arith.constant 0 : index
    %c0_31 = arith.constant 0 : index
    %c0_32 = arith.constant 0 : index
    %53 = vector.load %arg9[%c0_30, %c0_31, %c0_32] : memref<2x8x128xf32, #tpu.memory_space<vmem>>, vector<2x8x128xf32>
    tpu.vector_store %arg9[%c0_30, %c0_31, %c0_32], %24 {strides = array<i32>} : memref<2x8x128xf32, #tpu.memory_space<vmem>>, vector<2x8x128xf32>,
    %c0_33 = arith.constant 0 : index
    %c0_34 = arith.constant 0 : index
    %c0_35 = arith.constant 0 : index
    %54 = vector.load %arg10[%c0_33, %c0_34, %c0_35] : memref<2x8x128xf32, #tpu.memory_space<vmem>>, vector<2x8x128xf32>
    tpu.vector_store %arg10[%c0_33, %c0_34, %c0_35], %42 {strides = array<i32>} : memref<2x8x128xf32, #tpu.memory_space<vmem>>, vector<2x8x128xf32>,
    %c0_36 = arith.constant 0 : index
    %c0_37 = arith.constant 0 : index
    %c0_38 = arith.constant 0 : index
    %55 = vector.load %arg11[%c0_36, %c0_37, %c0_38] : memref<2x8x128xf32, #tpu.memory_space<vmem>>, vector<2x8x128xf32>
    tpu.vector_store %arg11[%c0_36, %c0_37, %c0_38], %33 {strides = array<i32>} : memref<2x8x128xf32, #tpu.memory_space<vmem>>, vector<2x8x128xf32>,
    return
  }
  func.func @transform_0(%arg0: i32, %arg1: i32) -> (i32, i32, i32) {
    %c0_i32 = arith.constant 0 : i32
    %c0_i32_0 = arith.constant 0 : i32
    return %arg0, %arg1, %c0_i32 : i32, i32, i32
  }
  func.func @transform_1(%arg0: i32, %arg1: i32) -> (i32, i32, i32) {
    %c0_i32 = arith.constant 0 : i32
    %c0_i32_0 = arith.constant 0 : i32
    %c0_i32_1 = arith.constant 0 : i32
    return %arg0, %c0_i32, %c0_i32_0 : i32, i32, i32
  }
  func.func @transform_2(%arg0: i32, %arg1: i32) -> (i32, i32) {
    %c0_i32 = arith.constant 0 : i32
    %c0_i32_0 = arith.constant 0 : i32
    %c0_i32_1 = arith.constant 0 : i32
    return %c0_i32, %c0_i32_0 : i32, i32
  }
  func.func @transform_3(%arg0: i32, %arg1: i32) -> (i32, i32) {
    %c0_i32 = arith.constant 0 : i32
    %c0_i32_0 = arith.constant 0 : i32
    %c0_i32_1 = arith.constant 0 : i32
    return %c0_i32, %c0_i32_0 : i32, i32
  }
  func.func @transform_4(%arg0: i32, %arg1: i32) -> (i32, i32, i32) {
    %c0_i32 = arith.constant 0 : i32
    %c0_i32_0 = arith.constant 0 : i32
    return %arg0, %arg1, %c0_i32 : i32, i32, i32
  }
  func.func @transform_5(%arg0: i32, %arg1: i32) -> (i32, i32, i32) {
    %c0_i32 = arith.constant 0 : i32
    %c0_i32_0 = arith.constant 0 : i32
    return %arg0, %arg1, %c0_i32 : i32, i32, i32
  }
  func.func @transform_6(%arg0: i32, %arg1: i32) -> (i32, i32, i32) {
    %c0_i32 = arith.constant 0 : i32
    %c0_i32_0 = arith.constant 0 : i32
    return %arg0, %arg1, %c0_i32 : i32, i32, i32
  }
  func.func @transform_7(%arg0: i32, %arg1: i32) -> (i32, i32, i32) {
    %c0_i32 = arith.constant 0 : i32
    %c0_i32_0 = arith.constant 0 : i32
    return %arg0, %arg1, %c0_i32 : i32, i32, i32
  }
  func.func @transform_8(%arg0: i32, %arg1: i32) -> (i32, i32, i32) {
    %c0_i32 = arith.constant 0 : i32
    %c0_i32_0 = arith.constant 0 : i32
    return %arg0, %arg1, %c0_i32 : i32, i32, i32
  }
  func.func @transform_9(%arg0: i32, %arg1: i32) -> (i32, i32, i32) {
    %c0_i32 = arith.constant 0 : i32
    %c0_i32_0 = arith.constant 0 : i32
    return %arg0, %arg1, %c0_i32 : i32, i32, i32
  }
}

module attributes {stable_mosaic.version = 11 : i64} {
  func.func @lstm_cell_kernel(%arg0: i32, %arg1: i32, %arg2: memref<2x8x128xf32, #tpu.memory_space<vmem>>, %arg3: memref<2x1x128xf32, #tpu.memory_space<vmem>>, %arg4: memref<128x512xf32, #tpu.memory_space<vmem>>, %arg5: memref<1x512xf32, #tpu.memory_space<vmem>>, %arg6: memref<2x8x128xf32, #tpu.memory_space<vmem>>, %arg7: memref<2x8x128xf32, #tpu.memory_space<vmem>>, %arg8: memref<2x8x128xf32, #tpu.memory_space<vmem>>, %arg9: memref<2x8x128xf32, #tpu.memory_space<vmem>>, %arg10: memref<2x8x128xf32, #tpu.memory_space<vmem>>, %arg11: memref<2x8x128xf32, #tpu.memory_space<vmem>>) attributes {dimension_semantics = [#tpu.dimension_semantics<parallel>, #tpu.dimension_semantics<parallel>], iteration_bounds = array<i64: 1, 1>, scalar_prefetch = 0 : i64, scratch_operands = 0 : i64, tpu.core_type = #tpu.core_type<tc>, window_params = [{transform_indices = @transform_0, window_bounds = array<i64: 2, 8, 128>}, {transform_indices = @transform_1, window_bounds = array<i64: 2, 1, 128>}, {pipeline_mode = #tpu.pipeline_mode<synchronous>, transform_indices = @transform_2, window_bounds = array<i64: 128, 512>}, {pipeline_mode = #tpu.pipeline_mode<synchronous>, transform_indices = @transform_3, window_bounds = array<i64: 1, 512>}, {transform_indices = @transform_4, window_bounds = array<i64: 2, 8, 128>}, {transform_indices = @transform_5, window_bounds = array<i64: 2, 8, 128>}, {transform_indices = @transform_6, window_bounds = array<i64: 2, 8, 128>}, {transform_indices = @transform_7, window_bounds = array<i64: 2, 8, 128>}, {transform_indices = @transform_8, window_bounds = array<i64: 2, 8, 128>}, {transform_indices = @transform_9, window_bounds = array<i64: 2, 8, 128>}]} {
    %c0 = arith.constant 0 : index
    %c0_0 = arith.constant 0 : index
    %c0_1 = arith.constant 0 : index
    %0 = vector.load %arg2[%c0, %c0_0, %c0_1] : memref<2x8x128xf32, #tpu.memory_space<vmem>>, vector<2x8x128xf32>
    %1 = vector.shape_cast %0 : vector<2x8x128xf32> to vector<16x128xf32>
    %c0_2 = arith.constant 0 : index
    %c0_3 = arith.constant 0 : index
    %2 = vector.load %arg4[%c0_2, %c0_3] : memref<128x512xf32, #tpu.memory_space<vmem>>, vector<128x512xf32>
    %cst = arith.constant dense<0.000000e+00> : vector<16x512xf32>
    %3 = tpu.matmul %1, %2, %cst {dimension_numbers = #tpu.dot_dimension_numbers<[1], [0], [0], [1], [0, 0, 1, 1], [], []>} : vector<16x128xf32>, vector<128x512xf32>, vector<16x512xf32> -> vector<16x512xf32>
    %c0_4 = arith.constant 0 : index
    %c0_5 = arith.constant 0 : index
    %4 = vector.load %arg5[%c0_4, %c0_5] : memref<1x512xf32, #tpu.memory_space<vmem>>, vector<1x512xf32>
    %5 = vector.broadcast %4 : vector<1x512xf32> to vector<16x512xf32>
    %6 = arith.addf %3, %5 : vector<16x512xf32>
    %7 = vector.extract_strided_slice %6 {offsets = [0, 0], sizes = [16, 128], strides = [1, 1]} : vector<16x512xf32> to vector<16x128xf32>
    %cst_6 = arith.constant 5.000000e-01 : f32
    %8 = vector.broadcast %cst_6 : f32 to vector<16x128xf32>
    %9 = arith.mulf %8, %7 : vector<16x128xf32>
    %10 = math.tanh %9 : vector<16x128xf32>
    %cst_7 = arith.constant 5.000000e-01 : f32
    %11 = vector.broadcast %cst_7 : f32 to vector<16x128xf32>
    %12 = arith.mulf %11, %10 : vector<16x128xf32>
    %cst_8 = arith.constant 5.000000e-01 : f32
    %13 = vector.broadcast %cst_8 : f32 to vector<16x128xf32>
    %14 = arith.addf %12, %13 : vector<16x128xf32>
    %15 = vector.shape_cast %14 : vector<16x128xf32> to vector<2x8x128xf32>
    %16 = vector.extract_strided_slice %6 {offsets = [0, 128], sizes = [16, 128], strides = [1, 1]} : vector<16x512xf32> to vector<16x128xf32>
    %cst_9 = arith.constant 5.000000e-01 : f32
    %17 = vector.broadcast %cst_9 : f32 to vector<16x128xf32>
    %18 = arith.mulf %17, %16 : vector<16x128xf32>
    %19 = math.tanh %18 : vector<16x128xf32>
    %cst_10 = arith.constant 5.000000e-01 : f32
    %20 = vector.broadcast %cst_10 : f32 to vector<16x128xf32>
    %21 = arith.mulf %20, %19 : vector<16x128xf32>
    %cst_11 = arith.constant 5.000000e-01 : f32
    %22 = vector.broadcast %cst_11 : f32 to vector<16x128xf32>
    %23 = arith.addf %21, %22 : vector<16x128xf32>
    %24 = vector.shape_cast %23 : vector<16x128xf32> to vector<2x8x128xf32>
    %25 = vector.extract_strided_slice %6 {offsets = [0, 256], sizes = [16, 128], strides = [1, 1]} : vector<16x512xf32> to vector<16x128xf32>
    %cst_12 = arith.constant 5.000000e-01 : f32
    %26 = vector.broadcast %cst_12 : f32 to vector<16x128xf32>
    %27 = arith.mulf %26, %25 : vector<16x128xf32>
    %28 = math.tanh %27 : vector<16x128xf32>
    %cst_13 = arith.constant 5.000000e-01 : f32
    %29 = vector.broadcast %cst_13 : f32 to vector<16x128xf32>
    %30 = arith.mulf %29, %28 : vector<16x128xf32>
    %cst_14 = arith.constant 5.000000e-01 : f32
    %31 = vector.broadcast %cst_14 : f32 to vector<16x128xf32>
    %32 = arith.addf %30, %31 : vector<16x128xf32>
    %33 = vector.shape_cast %32 : vector<16x128xf32> to vector<2x8x128xf32>
    %34 = vector.extract_strided_slice %6 {offsets = [0, 384], sizes = [16, 128], strides = [1, 1]} : vector<16x512xf32> to vector<16x128xf32>
    %cst_15 = arith.constant 5.000000e-01 : f32
    %35 = vector.broadcast %cst_15 : f32 to vector<16x128xf32>
    %36 = arith.mulf %35, %34 : vector<16x128xf32>
    %37 = math.tanh %36 : vector<16x128xf32>
    %cst_16 = arith.constant 5.000000e-01 : f32
    %38 = vector.broadcast %cst_16 : f32 to vector<16x128xf32>
    %39 = arith.mulf %38, %37 : vector<16x128xf32>
    %cst_17 = arith.constant 5.000000e-01 : f32
    %40 = vector.broadcast %cst_17 : f32 to vector<16x128xf32>
    %41 = arith.addf %39, %40 : vector<16x128xf32>
    %42 = vector.shape_cast %41 : vector<16x128xf32> to vector<2x8x128xf32>
    %c0_18 = arith.constant 0 : index
    %c0_19 = arith.constant 0 : index
    %c0_20 = arith.constant 0 : index
    %43 = vector.load %arg3[%c0_18, %c0_19, %c0_20] : memref<2x1x128xf32, #tpu.memory_space<vmem>>, vector<2x1x128xf32>
    %44 = vector.broadcast %43 : vector<2x1x128xf32> to vector<2x8x128xf32>
    %45 = arith.mulf %24, %44 : vector<2x8x128xf32>
    %46 = arith.mulf %15, %33 : vector<2x8x128xf32>
    %47 = arith.addf %45, %46 : vector<2x8x128xf32>
    %48 = math.tanh %47 : vector<2x8x128xf32>
    %49 = arith.mulf %42, %48 : vector<2x8x128xf32>
    %c0_21 = arith.constant 0 : index
    %c0_22 = arith.constant 0 : index
    %c0_23 = arith.constant 0 : index
    %50 = vector.load %arg6[%c0_21, %c0_22, %c0_23] : memref<2x8x128xf32, #tpu.memory_space<vmem>>, vector<2x8x128xf32>
    tpu.vector_store %arg6[%c0_21, %c0_22, %c0_23], %49 {strides = array<i32>} : memref<2x8x128xf32, #tpu.memory_space<vmem>>, vector<2x8x128xf32>,
    %c0_24 = arith.constant 0 : index
    %c0_25 = arith.constant 0 : index
    %c0_26 = arith.constant 0 : index
    %51 = vector.load %arg7[%c0_24, %c0_25, %c0_26] : memref<2x8x128xf32, #tpu.memory_space<vmem>>, vector<2x8x128xf32>
    tpu.vector_store %arg7[%c0_24, %c0_25, %c0_26], %47 {strides = array<i32>} : memref<2x8x128xf32, #tpu.memory_space<vmem>>, vector<2x8x128xf32>,
    %c0_27 = arith.constant 0 : index
    %c0_28 = arith.constant 0 : index
    %c0_29 = arith.constant 0 : index
    %52 = vector.load %arg8[%c0_27, %c0_28, %c0_29] : memref<2x8x128xf32, #tpu.memory_space<vmem>>, vector<2x8x128xf32>
    tpu.vector_store %arg8[%c0_27, %c0_28, %c0_29], %15 {strides = array<i32>} : memref<2x8x128xf32, #tpu.memory_space<vmem>>, vector<2x8x128xf32>,
    %c0_30 = arith.constant 0 : index
    %c0_31 = arith.constant 0 : index
    %c0_32 = arith.constant 0 : index
    %53 = vector.load %arg9[%c0_30, %c0_31, %c0_32] : memref<2x8x128xf32, #tpu.memory_space<vmem>>, vector<2x8x128xf32>
    tpu.vector_store %arg9[%c0_30, %c0_31, %c0_32], %24 {strides = array<i32>} : memref<2x8x128xf32, #tpu.memory_space<vmem>>, vector<2x8x128xf32>,
    %c0_33 = arith.constant 0 : index
    %c0_34 = arith.constant 0 : index
    %c0_35 = arith.constant 0 : index
    %54 = vector.load %arg10[%c0_33, %c0_34, %c0_35] : memref<2x8x128xf32, #tpu.memory_space<vmem>>, vector<2x8x128xf32>
    tpu.vector_store %arg10[%c0_33, %c0_34, %c0_35], %42 {strides = array<i32>} : memref<2x8x128xf32, #tpu.memory_space<vmem>>, vector<2x8x128xf32>,
    %c0_36 = arith.constant 0 : index
    %c0_37 = arith.constant 0 : index
    %c0_38 = arith.constant 0 : index
    %55 = vector.load %arg11[%c0_36, %c0_37, %c0_38] : memref<2x8x128xf32, #tpu.memory_space<vmem>>, vector<2x8x128xf32>
    tpu.vector_store %arg11[%c0_36, %c0_37, %c0_38], %33 {strides = array<i32>} : memref<2x8x128xf32, #tpu.memory_space<vmem>>, vector<2x8x128xf32>,
    return
  }
  func.func @transform_0(%arg0: i32, %arg1: i32) -> (i32, i32, i32) {
    %c0_i32 = arith.constant 0 : i32
    %c0_i32_0 = arith.constant 0 : i32
    return %arg0, %arg1, %c0_i32 : i32, i32, i32
  }
  func.func @transform_1(%arg0: i32, %arg1: i32) -> (i32, i32, i32) {
    %c0_i32 = arith.constant 0 : i32
    %c0_i32_0 = arith.constant 0 : i32
    %c0_i32_1 = arith.constant 0 : i32
    return %arg0, %c0_i32, %c0_i32_0 : i32, i32, i32
  }
  func.func @transform_2(%arg0: i32, %arg1: i32) -> (i32, i32) {
    %c0_i32 = arith.constant 0 : i32
    %c0_i32_0 = arith.constant 0 : i32
    %c0_i32_1 = arith.constant 0 : i32
    return %c0_i32, %c0_i32_0 : i32, i32
  }
  func.func @transform_3(%arg0: i32, %arg1: i32) -> (i32, i32) {
    %c0_i32 = arith.constant 0 : i32
    %c0_i32_0 = arith.constant 0 : i32
    %c0_i32_1 = arith.constant 0 : i32
    return %c0_i32, %c0_i32_0 : i32, i32
  }
  func.func @transform_4(%arg0: i32, %arg1: i32) -> (i32, i32, i32) {
    %c0_i32 = arith.constant 0 : i32
    %c0_i32_0 = arith.constant 0 : i32
    return %arg0, %arg1, %c0_i32 : i32, i32, i32
  }
  func.func @transform_5(%arg0: i32, %arg1: i32) -> (i32, i32, i32) {
    %c0_i32 = arith.constant 0 : i32
    %c0_i32_0 = arith.constant 0 : i32
    return %arg0, %arg1, %c0_i32 : i32, i32, i32
  }
  func.func @transform_6(%arg0: i32, %arg1: i32) -> (i32, i32, i32) {
    %c0_i32 = arith.constant 0 : i32
    %c0_i32_0 = arith.constant 0 : i32
    return %arg0, %arg1, %c0_i32 : i32, i32, i32
  }
  func.func @transform_7(%arg0: i32, %arg1: i32) -> (i32, i32, i32) {
    %c0_i32 = arith.constant 0 : i32
    %c0_i32_0 = arith.constant 0 : i32
    return %arg0, %arg1, %c0_i32 : i32, i32, i32
  }
  func.func @transform_8(%arg0: i32, %arg1: i32) -> (i32, i32, i32) {
    %c0_i32 = arith.constant 0 : i32
    %c0_i32_0 = arith.constant 0 : i32
    return %arg0, %arg1, %c0_i32 : i32, i32, i32
  }
  func.func @transform_9(%arg0: i32, %arg1: i32) -> (i32, i32, i32) {
    %c0_i32 = arith.constant 0 : i32
    %c0_i32_0 = arith.constant 0 : i32
    return %arg0, %arg1, %c0_i32 : i32, i32, i32
  }
}

</mosaic_0001>

<bundles_post_ra>
// kernel: tpu_custom_call.1
= control target key start
LH: loop header
LB: loop body
LE: loop exit
PB: predicated region body
PF: predicated region fallthrough
CT: control target
= control target key end

     0   :  { %15 = vsyncpa [#allocation3], 0  ;;  %s987_s0 = inlined_call_operand.hbm [shape: f32[2,8,128], index: 0, kind: input, shape index: {}]   ;;  %s988_s1 = inlined_call_operand.vmem [shape: f32[2,1,128], index: 1, kind: input, shape index: {}]   ;;  %s989_s2 = inlined_call_operand.hbm [shape: f32[128,512], index: 2, kind: input, shape index: {}]   ;;  %s990_s3 = inlined_call_operand.vmem [shape: f32[1,512], index: 3, kind: input, shape index: {}]   ;;  %s991_s4 = inlined_call_operand.hbm [shape: f32[2,8,128], index: 4, kind: output, shape index: {0}]   ;;  %s992_s5 = inlined_call_operand.hbm [shape: f32[2,8,128], index: 5, kind: output, shape index: {1}]   ;;  %s993_s6 = inlined_call_operand.hbm [shape: f32[2,8,128], index: 6, kind: output, shape index: {2}]   ;;  %s994_s7 = inlined_call_operand.hbm [shape: f32[2,8,128], index: 7, kind: output, shape index: {3}]   ;;  %s995_s8 = inlined_call_operand.hbm [shape: f32[2,8,128], index: 8, kind: output, shape index: {4}]   ;;  %s996_s9 = inlined_call_operand.hbm [shape: f32[2,8,128], index: 9, kind: output, shape index: {5}]  }
   0x1   :  { %16 = vsyncpa [#allocation6], 0 }
   0x2   :  { %17 = vsyncpa [#allocation4], 0 }
   0x3   :  { %18 = vsyncpa [#allocation9], 0 }
   0x4   :  { %19 = vsyncpa [#allocation12], 0 }
   0x5   :  { %20 = vsyncpa [#allocation15], 0  ;;  %s748_s30 = smov [#allocation2]   ;;  %s560_s13 = scalar_lea.hbm %s987_s0, 256 }
   0x6   :  { %s26_s10 = sshll.u32 %s748_s30, 4  ;;  %p561_p0 = scmp.ne.s32.totalorder %s987_s0, %s560_s13  ;;  %s27_s10 = int_to_ptr.vmem [resolvable:$true] %s26_s10 }
   0x7   :  { %p564_p1 = scmp.lt.u32.totalorder %s560_s13, %s987_s0 }
   0x9   :  { %p566_p2 = pnand %p564_p1, %p561_p0 }
   0xb   :  { %569 = shalt.err (!%p566_p2)
}
   0xc   :  { %s570_s18 = scalar_lea.vmem %s27_s10, 256  ;;  %p575_p4 = scmp.lt.s32.totalorder %s27_s10, %s27_s10 }
   0xd   :  { %p571_p3 = scmp.ne.s32.totalorder %s27_s10, %s570_s18  ;;  %p576_p5 = scmp.lt.s32.totalorder %s570_s18, %s570_s18 }
   0xf   :  { %p577_p6 = por %p576_p5, %p575_p4 }
  0x11   :  { %p578_p7 = pnand %p577_p6, %p571_p3 }
  0x13   :  { %581 = shalt.err (!%p578_p7)
}
  0x14   :  { %s749_s19 = smov 128   ;;  %s750_s20 = smov 8  }
  0x15   :  { %32 = dma.hbm_to_vmem [thread:$0]  %s987_s0, 256, %s27_s10, [#allocation3], %s749_s19, %s749_s19, %s750_s20  }
  0x16   :  { %s751_s23 = smov [#allocation5]   ;;  %s582_s27 = scalar_lea.hbm %s989_s2, 8192 }
  0x17   :  { %s40_s24 = sshll.u32 %s751_s23, 4  ;;  %p583_p8 = scmp.ne.s32.totalorder %s989_s2, %s582_s27  ;;  %s41_s24 = int_to_ptr.vmem [resolvable:$true] %s40_s24 }
  0x18   :  { %p586_p9 = scmp.lt.u32.totalorder %s582_s27, %s989_s2 }
  0x1a   :  { %p588_p10 = pnand %p586_p9, %p583_p8 }
  0x1c   :  { %591 = shalt.err (!%p588_p10)
}
  0x1d   :  { %s592_s12 = scalar_lea.vmem %s41_s24, 8192  ;;  %p597_p12 = scmp.lt.s32.totalorder %s41_s24, %s41_s24 }
  0x1e   :  { %p593_p11 = scmp.ne.s32.totalorder %s41_s24, %s592_s12  ;;  %p598_p13 = scmp.lt.s32.totalorder %s592_s12, %s592_s12 }
  0x20   :  { %p599_p0 = por %p598_p13, %p597_p12 }
  0x22   :  { %p600_p1 = pnand %p599_p0, %p593_p11 }
  0x24   :  { %603 = shalt.err (!%p600_p1)
}
  0x25   :  { %s752_s0 = smov 512   ;;  %s753_s10 = smov 32  }
  0x26   :  { %46 = dma.hbm_to_vmem [thread:$0]  %s989_s2, 8192, %s41_s24, [#allocation6], %s752_s0, %s752_s0, %s753_s10  }
  0x27   :  { %736 = dma.done.wait [#allocation3], 256  }
  0x28   :  { %737 = vsyncadd [#allocation3], 4294967040 }
  0x29   :  { %738 = dma.done.wait [#allocation6], 8192  }
  0x2a   :  { %739 = vsyncadd [#allocation6], 4294959104  ;;  %v754_v0 = vmov 0.0   ;;  %v58_v1 = vld [vmem:[#allocation5 + $0x8] sm:$0xff]  ;;  %v60_v3 = vld [vmem:[#allocation5 + $0x18] sm:$0xff]  ;;  %s755_s17 = smov [#allocation14]  }
  0x2b   :  { %207 = vmatprep.mubr.f32.mxu0 %v754_v0  ;;  %284 = vmatprep.mubr.f32.mxu1 %v754_v0  ;;  %v62_v2 = vld [vmem:[#allocation5 + $0x28] sm:$0xff]  ;;  %v64_v5 = vld [vmem:[#allocation5 + $0x38] sm:$0xff]  ;;  %v57_v6 = vld [vmem:[#allocation5] sm:$0xff]  ;;  %s430_s18 = sshll.u32 %s755_s17, 4  ;;  %s756_s21 = smov [#allocation8]   ;;  %s854_s18 = int_to_ptr.vmem [resolvable:$true] %s430_s18 }
  0x2c   :  { %v463_v4 = vpack.c.bf16 %v62_v2, %v58_v1  ;;  %v61_v7 = vld [vmem:[#allocation5 + $0x20] sm:$0xff]  ;;  %v495_v8 = vpack.c.bf16 %v64_v5, %v60_v3  ;;  %v59_v10 = vld [vmem:[#allocation5 + $0x10] sm:$0xff]  ;;  %v66_v12 = vld [vmem:[#allocation5 + $0x48] sm:$0xff]  ;;  %s382_s22 = sshll.u32 %s756_s21, 4  ;;  %s757_s23 = smov [#allocation11]   ;;  %s856_s22 = int_to_ptr.vmem [resolvable:$true] %s382_s22 }
  0x2d   :  { %v465_v9 = vpack.c.bf16 %v61_v7, %v57_v6  ;;  %v63_v11 = vld [vmem:[#allocation5 + $0x30] sm:$0xff]  ;;  %v70_v14 = vld [vmem:[#allocation5 + $0x68] sm:$0xff]  ;;  %v68_v15 = vld [vmem:[#allocation5 + $0x58] sm:$0xff]  ;;  %s406_s24 = sshll.u32 %s757_s23, 4  ;;  %s758_s25 = smov [#allocation13]   ;;  %s858_s24 = int_to_ptr.vmem [resolvable:$true] %s406_s24 }
  0x2e   :  { %464 = vmatprep.subr.bf16.mxu0 %v463_v4  ;;  %v497_v13 = vpack.c.bf16 %v63_v11, %v59_v10  ;;  %v72_v16 = vld [vmem:[#allocation5 + $0x78] sm:$0xff]  ;;  %496 = vmatprep.subr.bf16.mxu1 %v495_v8  ;;  %v467_v17 = vpack.c.bf16 %v70_v14, %v66_v12  ;;  %v65_v19 = vld [vmem:[#allocation5 + $0x40] sm:$0xff]  ;;  %v67_v21 = vld [vmem:[#allocation5 + $0x50] sm:$0xff]  ;;  %s418_s26 = sshll.u32 %s758_s25, 4  ;;  %s759_s29 = smov [#allocation10]   ;;  %s864_s26 = int_to_ptr.vmem [resolvable:$true] %s418_s26 }
  0x2f   :  { %466 = vmatpush1.bf16.msra.mxu0 %v465_v9  ;;  %v499_v18 = vpack.c.bf16 %v72_v16, %v68_v15  ;;  %v69_v20 = vld [vmem:[#allocation5 + $0x60] sm:$0xff]  ;;  %v71_v23 = vld [vmem:[#allocation5 + $0x70] sm:$0xff]  ;;  %v74_v24 = vld [vmem:[#allocation5 + $0x88] sm:$0xff]  ;;  %s862_s30 = sshll.u32 %s759_s29, 4  ;;  %p609_p3 = scmp.lt.s32.totalorder %s854_s18, %s854_s18  ;;  %s928_s30 = int_to_ptr.vmem [resolvable:$true] %s862_s30 }
  0x30   :  { %498 = vmatpush1.bf16.msra.mxu1 %v497_v13  ;;  %v469_v22 = vpack.c.bf16 %v69_v20, %v65_v19  ;;  %v78_v25 = vld [vmem:[#allocation5 + $0xa8] sm:$0xff]  ;;  %468 = vmatprep.subr.bf16.mxu0 %v467_v17  ;;  %v501_v26 = vpack.c.bf16 %v71_v23, %v67_v21  ;;  %v76_v28 = vld [vmem:[#allocation5 + $0x98] sm:$0xff]  ;;  %v73_v30 = vld [vmem:[#allocation5 + $0x80] sm:$0xff] }
  0x31   :  { %500 = vmatprep.subr.bf16.mxu1 %v499_v18  ;;  %v471_v27 = vpack.c.bf16 %v78_v25, %v74_v24  ;;  %v80_v29 = vld [vmem:[#allocation5 + $0xb8] sm:$0xff]  ;;  %v77_v32 = vld [vmem:[#allocation5 + $0xa0] sm:$0xff]  ;;  %v75_v33 = vld [vmem:[#allocation5 + $0x90] sm:$0xff] }
  0x32   :  { %v503_v31 = vpack.c.bf16 %v80_v29, %v76_v28  ;;  %v79_v34 = vld [vmem:[#allocation5 + $0xb0] sm:$0xff]  ;;  %v473_v35 = vpack.c.bf16 %v77_v32, %v73_v30  ;;  %v82_v36 = vld [vmem:[#allocation5 + $0xc8] sm:$0xff]  ;;  %v84_v38 = vld [vmem:[#allocation5 + $0xd8] sm:$0xff] }
  0x33   :  { %470 = vmatpush1.bf16.msra.mxu0 %v469_v22  ;;  %v86_v37 = vld [vmem:[#allocation5 + $0xe8] sm:$0xff]  ;;  %v505_v39 = vpack.c.bf16 %v79_v34, %v75_v33  ;;  %v88_v41 = vld [vmem:[#allocation5 + $0xf8] sm:$0xff]  ;;  %v81_v42 = vld [vmem:[#allocation5 + $0xc0] sm:$0xff] }
  0x34   :  { %502 = vmatpush1.bf16.msra.mxu1 %v501_v26  ;;  %472 = vmatprep.subr.bf16.mxu0 %v471_v27  ;;  %v475_v40 = vpack.c.bf16 %v86_v37, %v82_v36  ;;  %v85_v43 = vld [vmem:[#allocation5 + $0xe0] sm:$0xff]  ;;  %v507_v44 = vpack.c.bf16 %v88_v41, %v84_v38  ;;  %v83_v45 = vld [vmem:[#allocation5 + $0xd0] sm:$0xff]  ;;  %v90_v47 = vld [vmem:[#allocation5 + $0x108] sm:$0xff]  ;;  %v123_v36 = vlaneseq }
  0x35   :  { %504 = vmatprep.subr.bf16.mxu1 %v503_v31  ;;  %v87_v46 = vld [vmem:[#allocation5 + $0xf0] sm:$0xff]  ;;  %v94_v48 = vld [vmem:[#allocation5 + $0x128] sm:$0xff]  ;;  %v92_v49 = vld [vmem:[#allocation5 + $0x118] sm:$0xff]  ;;  %v477_v51 = vpack.c.bf16 %v85_v43, %v81_v42 }
  0x36   :  { %v96_v50 = vld [vmem:[#allocation5 + $0x138] sm:$0xff]  ;;  %v509_v52 = vpack.c.bf16 %v87_v46, %v83_v45  ;;  %v479_v53 = vpack.c.bf16 %v94_v48, %v90_v47  ;;  %v89_v54 = vld [vmem:[#allocation5 + $0x100] sm:$0xff]  ;;  %v91_v56 = vld [vmem:[#allocation5 + $0x110] sm:$0xff]  ;;  %v124_v37 = vshrl.u32 %v123_v36, 7 }
  0x37   :  { %474 = vmatpush1.bf16.msra.mxu0 %v473_v35  ;;  %v93_v55 = vld [vmem:[#allocation5 + $0x120] sm:$0xff]  ;;  %v511_v57 = vpack.c.bf16 %v96_v50, %v92_v49  ;;  %v95_v58 = vld [vmem:[#allocation5 + $0x130] sm:$0xff]  ;;  %v98_v59 = vld [vmem:[#allocation5 + $0x148] sm:$0xff] }
  0x38   :  { %506 = vmatpush1.bf16.msra.mxu1 %v505_v39  ;;  %476 = vmatprep.subr.bf16.mxu0 %v475_v40  ;;  %v102_v60 = vld [vmem:[#allocation5 + $0x168] sm:$0xff]  ;;  %v100_v61 = vld [vmem:[#allocation5 + $0x158] sm:$0xff]  ;;  %v481_v63 = vpack.c.bf16 %v93_v55, %v89_v54  ;;  %v513_v1 = vpack.c.bf16 %v95_v58, %v91_v56  ;;  %v97_v3 = vld [vmem:[#allocation5 + $0x140] sm:$0xff]  ;;  %v125_v38 = vsub.s32 0, %v124_v37  ;;  %v133_v40 = vsub.s32 2, %v124_v37 }
  0x39   :  { %508 = vmatprep.subr.bf16.mxu1 %v507_v44  ;;  %v104_v62 = vld [vmem:[#allocation5 + $0x178] sm:$0xff]  ;;  %v483_v2 = vpack.c.bf16 %v102_v60, %v98_v59  ;;  %v101_v4 = vld [vmem:[#allocation5 + $0x160] sm:$0xff]  ;;  %v99_v5 = vld [vmem:[#allocation5 + $0x150] sm:$0xff]  ;;  %v129_v41 = vsub.s32 1, %v124_v37  ;;  %v137_v42 = vsub.s32 3, %v124_v37 }
  0x3a   :  { %v515_v6 = vpack.c.bf16 %v104_v62, %v100_v61  ;;  %v103_v7 = vld [vmem:[#allocation5 + $0x170] sm:$0xff]  ;;  %v106_v8 = vld [vmem:[#allocation5 + $0x188] sm:$0xff]  ;;  %v108_v10 = vld [vmem:[#allocation5 + $0x198] sm:$0xff]  ;;  %v485_v12 = vpack.c.bf16 %v101_v4, %v97_v3 }
  0x3b   :  { %478 = vmatpush1.bf16.msra.mxu0 %v477_v51  ;;  %v110_v9 = vld [vmem:[#allocation5 + $0x1a8] sm:$0xff]  ;;  %v112_v11 = vld [vmem:[#allocation5 + $0x1b8] sm:$0xff]  ;;  %v517_v13 = vpack.c.bf16 %v103_v7, %v99_v5  ;;  %v105_v15 = vld [vmem:[#allocation5 + $0x180] sm:$0xff] }
  0x3c   :  { %510 = vmatpush1.bf16.msra.mxu1 %v509_v52  ;;  %480 = vmatprep.subr.bf16.mxu0 %v479_v53  ;;  %v487_v14 = vpack.c.bf16 %v110_v9, %v106_v8  ;;  %v109_v16 = vld [vmem:[#allocation5 + $0x1a0] sm:$0xff]  ;;  %v107_v17 = vld [vmem:[#allocation5 + $0x190] sm:$0xff]  ;;  %v519_v18 = vpack.c.bf16 %v112_v11, %v108_v10  ;;  %v114_v20 = vld [vmem:[#allocation5 + $0x1c8] sm:$0xff] }
  0x3d   :  { %512 = vmatprep.subr.bf16.mxu1 %v511_v57  ;;  %v111_v19 = vld [vmem:[#allocation5 + $0x1b0] sm:$0xff]  ;;  %v118_v21 = vld [vmem:[#allocation5 + $0x1e8] sm:$0xff]  ;;  %v116_v22 = vld [vmem:[#allocation5 + $0x1d8] sm:$0xff]  ;;  %v489_v24 = vpack.c.bf16 %v109_v16, %v105_v15 }
  0x3e   :  { %v120_v23 = vld [vmem:[#allocation5 + $0x1f8] sm:$0xff]  ;;  %v521_v25 = vpack.c.bf16 %v111_v19, %v107_v17  ;;  %v491_v26 = vpack.c.bf16 %v118_v21, %v114_v20  ;;  %v113_v27 = vld [vmem:[#allocation5 + $0x1c0] sm:$0xff]  ;;  %v115_v30 = vld [vmem:[#allocation5 + $0x1d0] sm:$0xff] }
  0x3f   :  { %482 = vmatpush1.bf16.msra.mxu0 %v481_v63  ;;  %v117_v28 = vld [vmem:[#allocation5 + $0x1e0] sm:$0xff]  ;;  %v523_v29 = vpack.c.bf16 %v120_v23, %v116_v22  ;;  %v119_v31 = vld [vmem:[#allocation5 + $0x1f0] sm:$0xff]  ;;  %v56_v35 = vld [vmem:[#allocation2 + $0x8] sm:$0xff] }
  0x40   :  { %514 = vmatpush1.bf16.msra.mxu1 %v513_v1  ;;  %484 = vmatprep.subr.bf16.mxu0 %v483_v2  ;;  %v493_v32 = vpack.c.bf16 %v117_v28, %v113_v27  ;;  %v525_v33 = vpack.c.bf16 %v119_v31, %v115_v30  ;;  %v55_v34 = vld [vmem:[#allocation2] sm:$0xff] }
  0x41   :  { %516 = vmatprep.subr.bf16.mxu1 %v515_v6  ;;  %v121_v39 = vld [vmem:[%s990_s3] sm:$0xf] }
  0x42   :  { %v126_v43 = vrot.slane %v121_v39, %v125_v38  ;;  %v134_v44 = vrot.slane %v121_v39, %v133_v40  ;;  %v130_v45 = vrot.slane %v121_v39, %v129_v41  ;;  %v138_v46 = vrot.slane %v121_v39, %v137_v42  ;;  %v461_v17 = vld [vmem:[%s988_s1] ss:$0 sm:$0xff]  ;;  %v462_v31 = vld [vmem:[%s988_s1 + $0x1] ss:$0 sm:$0xff]  ;;  %s604_s1 = scalar_lea.vmem %s854_s18, 256 }
  0x43   :  { %486 = vmatpush1.bf16.msra.mxu0 %v485_v12  ;;  %p605_p2 = scmp.ne.s32.totalorder %s854_s18, %s604_s1  ;;  %p610_p4 = scmp.lt.s32.totalorder %s604_s1, %s604_s1 }
  0x44   :  { %518 = vmatpush1.bf16.msra.mxu1 %v517_v13  ;;  %488 = vmatprep.subr.bf16.mxu0 %v487_v14 }
  0x45   :  { %520 = vmatprep.subr.bf16.mxu1 %v519_v18  ;;  %p611_p5 = por %p610_p4, %p609_p3 }
  0x47   :  { %490 = vmatpush1.bf16.msra.mxu0 %v489_v24  ;;  %p612_p6 = pnand %p611_p5, %p605_p2 }
  0x48   :  { %522 = vmatpush1.bf16.msra.mxu1 %v521_v25  ;;  %492 = vmatprep.subr.bf16.mxu0 %v491_v26 }
  0x49   :  { %524 = vmatprep.subr.bf16.mxu1 %v523_v29 }
  0x4b   :  { %494 = vmatpush1.bf16.msra.mxu0 %v493_v32 }
  0x4c   :  { %526 = vmatpush1.bf16.msra.mxu1 %v525_v33 }
  0x4e   :  { %208 = vmatmul.mubr.f32.vlgmr.msra.gmra.mrb[0].mxu0 %v55_v34 }
  0x4f   :  { %285 = vmatmul.mubr.f32.vlgmr.msra.gmra.mrb[0].mxu1 %v55_v34  ;;  %213 = vmatprep.mubr.f32.mxu0 %v754_v0 }
  0x50   :  { %290 = vmatprep.mubr.f32.mxu1 %v754_v0 }
  0x52   :  { %214 = vmatmul.mubr.f32.gmra.mrb[2].mxu0 %v56_v35 }
  0x53   :  { %291 = vmatmul.mubr.f32.gmra.mrb[2].mxu1 %v56_v35 }
 0x121   :  { %v209_v47 = vpop.f32.mrb[0].mxu0 }
 0x122   :  { %v210_v48 = vadd.f32 %v209_v47, %v126_v43  ;;  %v286_v49 = vpop.f32.mrb[0].mxu1  ;;  %v211_v0 = vpop.f32.mrb[1].mxu0 }
 0x123   :  { %v287_v50 = vadd.f32 %v286_v49, %v134_v44  ;;  %v212_v51 = vadd.f32 %v211_v0, %v130_v45  ;;  %v288_v52 = vpop.f32.mrb[1].mxu1 }
 0x124   :  { %v297_v53 = vmul.f32 0.5, %v210_v48  ;;  %v289_v54 = vadd.f32 %v288_v52, %v138_v46 }
 0x125   :  { %v313_v55 = vmul.f32 0.5, %v287_v50  ;;  %v305_v56 = vmul.f32 0.5, %v212_v51  ;;  %v215_v57 = vpop.f32.mrb[2].mxu0 }
 0x126   :  { %540 = vtanh.f32 %v297_v53  ;;  %v321_v58 = vmul.f32 0.5, %v289_v54  ;;  %v216_v59 = vadd.f32 %v215_v57, %v126_v43  ;;  %v292_v60 = vpop.f32.mrb[2].mxu1  ;;  %v217_v61 = vpop.f32.mrb[3].mxu0 }
 0x127   :  { %542 = vtanh.f32 %v313_v55  ;;  %v293_v62 = vadd.f32 %v292_v60, %v134_v44  ;;  %v218_v63 = vadd.f32 %v217_v61, %v130_v45  ;;  %v294_v1 = vpop.f32.mrb[3].mxu1 }
 0x128   :  { %544 = vtanh.f32 %v305_v56  ;;  %v298_v2 = vmul.f32 0.5, %v216_v59  ;;  %v295_v3 = vadd.f32 %v294_v1, %v138_v46 }
 0x129   :  { %546 = vtanh.f32 %v321_v58  ;;  %v314_v4 = vmul.f32 0.5, %v293_v62  ;;  %v306_v5 = vmul.f32 0.5, %v218_v63 }
 0x12a   :  { %548 = vtanh.f32 %v298_v2  ;;  %v322_v6 = vmul.f32 0.5, %v295_v3 }
 0x12b   :  { %550 = vtanh.f32 %v314_v4 }
 0x12c   :  { %552 = vtanh.f32 %v306_v5 }
 0x12d   :  { %554 = vtanh.f32 %v322_v6 }
 0x130   :  { %v541_v7 = vpop.eup %540 }
 0x131   :  { %v543_v8 = vpop.eup %542  ;;  %v301_v9 = vmul.f32 0.5, %v541_v7 }
 0x132   :  { %v545_v10 = vpop.eup %544  ;;  %v317_v11 = vmul.f32 0.5, %v543_v8 }
 0x133   :  { %v547_v12 = vpop.eup %546  ;;  %v303_v13 = vadd.f32 0.5, %v301_v9  ;;  %v309_v14 = vmul.f32 0.5, %v545_v10 }
 0x134   :  { %v549_v15 = vpop.eup %548  ;;  %v319_v16 = vadd.f32 0.5, %v317_v11  ;;  %v325_v18 = vmul.f32 0.5, %v547_v12 }
 0x135   :  { %v551_v19 = vpop.eup %550  ;;  %357 = vst [vmem:[#allocation10] sm:$0xff] %v303_v13  ;;  %v311_v20 = vadd.f32 0.5, %v309_v14  ;;  %v302_v21 = vmul.f32 0.5, %v549_v15 }
 0x136   :  { %v553_v22 = vpop.eup %552  ;;  %v345_v23 = vmul.f32 %v319_v16, %v303_v13  ;;  %363 = vst [vmem:[#allocation14] sm:$0xff] %v319_v16  ;;  %v848_v24 = vadd.f32 0.5, %v325_v18  ;;  %v318_v25 = vmul.f32 0.5, %v551_v19 }
 0x137   :  { %v555_v26 = vpop.eup %554  ;;  %v343_v27 = vmul.f32 %v461_v17, %v311_v20  ;;  %359 = vst [vmem:[#allocation11] sm:$0xff] %v311_v20  ;;  %v304_v28 = vadd.f32 0.5, %v302_v21  ;;  %v310_v29 = vmul.f32 0.5, %v553_v22 }
 0x138   :  { %361 = vst [vmem:[#allocation13] sm:$0xff] %v848_v24  ;;  %v320_v30 = vadd.f32 0.5, %v318_v25  ;;  %v326_v32 = vmul.f32 0.5, %v555_v26 }
 0x139   :  { %358 = vst [vmem:[#allocation10 + $0x8] sm:$0xff] %v304_v28  ;;  %v312_v33 = vadd.f32 0.5, %v310_v29  ;;  %v347_v34 = vadd.f32 %v345_v23, %v343_v27 }
 0x13a   :  { %v346_v35 = vmul.f32 %v320_v30, %v304_v28  ;;  %364 = vst [vmem:[#allocation14 + $0x8] sm:$0xff] %v320_v30  ;;  %v860_v36 = vadd.f32 0.5, %v326_v32 }
 0x13b   :  { %v344_v37 = vmul.f32 %v462_v31, %v312_v33  ;;  %360 = vst [vmem:[#allocation11 + $0x8] sm:$0xff] %v312_v33  ;;  %556 = vtanh.f32 %v347_v34  ;;  %355 = vst [vmem:[#allocation8] sm:$0xff] %v347_v34 }
 0x13c   :  { %615 = shalt.err (!%p612_p6)
}
 0x13d   :  { %s616_s0 = scalar_lea.hbm %s996_s9, 256 }
 0x13e   :  { %p617_p7 = scmp.ne.s32.totalorder %s996_s9, %s616_s0  ;;  %p620_p8 = scmp.lt.u32.totalorder %s616_s0, %s996_s9 }
 0x140   :  { %p622_p9 = pnand %p620_p8, %p617_p7 }
 0x142   :  { %625 = shalt.err (!%p622_p9)
}
 0x143   :  { %436 = dma.vmem_to_hbm [thread:$0]  %s854_s18, 256, %s996_s9, [#allocation15], %s749_s19, %s749_s19, %s750_s20   ;;  %362 = vst [vmem:[#allocation13 + $0x8] sm:$0xff] %v860_v36 }
 0x144   :  { %s626_s16 = scalar_lea.vmem %s858_s24, 256  ;;  %p631_p11 = scmp.lt.s32.totalorder %s858_s24, %s858_s24 }
 0x145   :  { %p627_p10 = scmp.ne.s32.totalorder %s858_s24, %s626_s16  ;;  %p632_p12 = scmp.lt.s32.totalorder %s626_s16, %s626_s16 }
 0x147   :  { %p633_p13 = por %p632_p12, %p631_p11 }
 0x149   :  { %p634_p0 = pnand %p633_p13, %p627_p10 }
 0x14b   :  { %637 = shalt.err (!%p634_p0)
}
 0x14c   :  { %s638_s23 = scalar_lea.hbm %s994_s7, 256 }
 0x14d   :  { %p639_p1 = scmp.ne.s32.totalorder %s994_s7, %s638_s23  ;;  %p642_p2 = scmp.lt.u32.totalorder %s638_s23, %s994_s7 }
 0x14f   :  { %p644_p3 = pnand %p642_p2, %p639_p1 }
 0x151   :  { %647 = shalt.err (!%p644_p3)
}
 0x152   :  { %412 = dma.vmem_to_hbm [thread:$0]  %s858_s24, 256, %s994_s7, [#allocation12], %s749_s19, %s749_s19, %s750_s20   ;;  %v348_v38 = vadd.f32 %v346_v35, %v344_v37 }
 0x153   :  { %s648_s1 = scalar_lea.vmem %s864_s26, 256  ;;  %p653_p5 = scmp.lt.s32.totalorder %s864_s26, %s864_s26 }
 0x154   :  { %p649_p4 = scmp.ne.s32.totalorder %s864_s26, %s648_s1  ;;  %p654_p6 = scmp.lt.s32.totalorder %s648_s1, %s648_s1 }
 0x156   :  { %p655_p7 = por %p654_p6, %p653_p5 }
 0x158   :  { %p656_p8 = pnand %p655_p7, %p649_p4 }
 0x15a   :  { %659 = shalt.err (!%p656_p8)
}
 0x15b   :  { %s660_s0 = scalar_lea.hbm %s995_s8, 256 }
 0x15c   :  { %p661_p9 = scmp.ne.s32.totalorder %s995_s8, %s660_s0  ;;  %p664_p10 = scmp.lt.u32.totalorder %s660_s0, %s995_s8 }
 0x15e   :  { %p666_p11 = pnand %p664_p10, %p661_p9 }
 0x160   :  { %669 = shalt.err (!%p666_p11)
}
 0x161   :  { %424 = dma.vmem_to_hbm [thread:$0]  %s864_s26, 256, %s995_s8, [#allocation12], %s749_s19, %s749_s19, %s750_s20   ;;  %558 = vtanh.f32 %v348_v38  ;;  %356 = vst [vmem:[#allocation8 + $0x8] sm:$0xff] %v348_v38 }
 0x162   :  { %s670_s15 = scalar_lea.vmem %s856_s22, 256  ;;  %p675_p13 = scmp.lt.s32.totalorder %s856_s22, %s856_s22 }
 0x163   :  { %p671_p12 = scmp.ne.s32.totalorder %s856_s22, %s670_s15  ;;  %p676_p0 = scmp.lt.s32.totalorder %s670_s15, %s670_s15 }
 0x165   :  { %p677_p1 = por %p676_p0, %p675_p13 }
 0x167   :  { %p678_p2 = pnand %p677_p1, %p671_p12 }
 0x169   :  { %681 = shalt.err (!%p678_p2)
}
 0x16a   :  { %s682_s17 = scalar_lea.hbm %s992_s5, 256 }
 0x16b   :  { %p683_p3 = scmp.ne.s32.totalorder %s992_s5, %s682_s17  ;;  %p686_p4 = scmp.lt.u32.totalorder %s682_s17, %s992_s5 }
 0x16d   :  { %p688_p5 = pnand %p686_p4, %p683_p3 }
 0x16f   :  { %691 = shalt.err (!%p688_p5)
}
 0x170   :  { %388 = dma.vmem_to_hbm [thread:$0]  %s856_s22, 256, %s992_s5, [#allocation9], %s749_s19, %s749_s19, %s750_s20  }
 0x171   :  { %s692_s28 = scalar_lea.vmem %s928_s30, 256  ;;  %p697_p7 = scmp.lt.s32.totalorder %s928_s30, %s928_s30 }
 0x172   :  { %p693_p6 = scmp.ne.s32.totalorder %s928_s30, %s692_s28  ;;  %p698_p8 = scmp.lt.s32.totalorder %s692_s28, %s692_s28 }
 0x174   :  { %p699_p9 = por %p698_p8, %p697_p7 }
 0x176   :  { %p700_p10 = pnand %p699_p9, %p693_p6 }
 0x178   :  { %703 = shalt.err (!%p700_p10)
}
 0x179   :  { %s704_s29 = scalar_lea.hbm %s993_s6, 256 }
 0x17a   :  { %p705_p11 = scmp.ne.s32.totalorder %s993_s6, %s704_s29  ;;  %p708_p12 = scmp.lt.u32.totalorder %s704_s29, %s993_s6 }
 0x17c   :  { %p710_p13 = pnand %p708_p12, %p705_p11 }
 0x17e   :  { %713 = shalt.err (!%p710_p13)
}
 0x17f   :  { %400 = dma.vmem_to_hbm [thread:$0]  %s928_s30, 256, %s993_s6, [#allocation9], %s749_s19, %s749_s19, %s750_s20   ;;  %v557_v39 = vpop.eup %556 }
 0x180   :  { %v351_v40 = vmul.f32 %v557_v39, %v848_v24  ;;  %s760_s10 = smov [#allocation7]   ;;  %v559_v41 = vpop.eup %558 }
 0x181   :  { %s370_s13 = sshll.u32 %s760_s10, 4  ;;  %v352_v42 = vmul.f32 %v559_v41, %v860_v36  ;;  %s371_s13 = int_to_ptr.vmem [resolvable:$true] %s370_s13 }
 0x182   :  { %353 = vst [vmem:[#allocation7] sm:$0xff] %v351_v40  ;;  %s714_s14 = scalar_lea.vmem %s371_s13, 256  ;;  %p719_p1 = scmp.lt.s32.totalorder %s371_s13, %s371_s13 }
 0x183   :  { %354 = vst [vmem:[#allocation7 + $0x8] sm:$0xff] %v352_v42  ;;  %p715_p0 = scmp.ne.s32.totalorder %s371_s13, %s714_s14  ;;  %p720_p2 = scmp.lt.s32.totalorder %s714_s14, %s714_s14 }
 0x185   :  { %p721_p3 = por %p720_p2, %p719_p1 }
 0x187   :  { %p722_p4 = pnand %p721_p3, %p715_p0 }
 0x189   :  { %725 = shalt.err (!%p722_p4)
}
 0x18a   :  { %s726_s30 = scalar_lea.hbm %s991_s4, 256 }
 0x18b   :  { %p727_p5 = scmp.ne.s32.totalorder %s991_s4, %s726_s30  ;;  %p730_p6 = scmp.lt.u32.totalorder %s726_s30, %s991_s4 }
 0x18d   :  { %p732_p7 = pnand %p730_p6, %p727_p5 }
 0x18f   :  { %735 = shalt.err (!%p732_p7)
}
 0x190   :  { %376 = dma.vmem_to_hbm [thread:$0]  %s371_s13, 256, %s991_s4, [#allocation4], %s749_s19, %s749_s19, %s750_s20  }
 0x191   :  { %740 = dma.done.wait [#allocation4], 256  }
 0x192   :  { %741 = vsyncadd [#allocation4], 4294967040 }
 0x193   :  { %742 = dma.done.wait [#allocation9], 512  }
 0x194   :  { %743 = vsyncadd [#allocation9], 4294966784 }
 0x195   :  { %744 = dma.done.wait [#allocation12], 512  }
 0x196   :  { %745 = vsyncadd [#allocation12], 4294966784 }
 0x197   :  { %746 = dma.done.wait [#allocation15], 256  }
 0x198   :  { %747 = vsyncadd [#allocation15], 4294967040 }
 0x199   :  { %455 = vsyncpa [#allocation3], 1 }
 0x19a   :  { %456 = vsyncpa [#allocation6], 1 }
 0x19b   :  { %457 = vsyncpa [#allocation4], 1 }
 0x19c   :  { %458 = vsyncpa [#allocation9], 1 }
 0x19d   :  { %459 = vsyncpa [#allocation12], 1 }
 0x19e   :  { %460 = vsyncpa [#allocation15], 1 }

// kernel: tpu_custom_call.1
= control target key start
LH: loop header
LB: loop body
LE: loop exit
PB: predicated region body
PF: predicated region fallthrough
CT: control target
= control target key end

     0   :  { %15 = vsyncpa [#allocation3], 0  ;;  %s987_s0 = inlined_call_operand.hbm [shape: f32[2,8,128], index: 0, kind: input, shape index: {}]   ;;  %s988_s1 = inlined_call_operand.vmem [shape: f32[2,1,128], index: 1, kind: input, shape index: {}]   ;;  %s989_s2 = inlined_call_operand.hbm [shape: f32[128,512], index: 2, kind: input, shape index: {}]   ;;  %s990_s3 = inlined_call_operand.vmem [shape: f32[1,512], index: 3, kind: input, shape index: {}]   ;;  %s991_s4 = inlined_call_operand.hbm [shape: f32[2,8,128], index: 4, kind: output, shape index: {0}]   ;;  %s992_s5 = inlined_call_operand.hbm [shape: f32[2,8,128], index: 5, kind: output, shape index: {1}]   ;;  %s993_s6 = inlined_call_operand.hbm [shape: f32[2,8,128], index: 6, kind: output, shape index: {2}]   ;;  %s994_s7 = inlined_call_operand.hbm [shape: f32[2,8,128], index: 7, kind: output, shape index: {3}]   ;;  %s995_s8 = inlined_call_operand.hbm [shape: f32[2,8,128], index: 8, kind: output, shape index: {4}]   ;;  %s996_s9 = inlined_call_operand.hbm [shape: f32[2,8,128], index: 9, kind: output, shape index: {5}]  }
   0x1   :  { %16 = vsyncpa [#allocation6], 0 }
   0x2   :  { %17 = vsyncpa [#allocation4], 0 }
   0x3   :  { %18 = vsyncpa [#allocation9], 0 }
   0x4   :  { %19 = vsyncpa [#allocation12], 0 }
   0x5   :  { %20 = vsyncpa [#allocation15], 0  ;;  %s748_s30 = smov [#allocation2]   ;;  %s560_s13 = scalar_lea.hbm %s987_s0, 256 }
   0x6   :  { %s26_s10 = sshll.u32 %s748_s30, 4  ;;  %p561_p0 = scmp.ne.s32.totalorder %s987_s0, %s560_s13  ;;  %s27_s10 = int_to_ptr.vmem [resolvable:$true] %s26_s10 }
   0x7   :  { %p564_p1 = scmp.lt.u32.totalorder %s560_s13, %s987_s0 }
   0x9   :  { %p566_p2 = pnand %p564_p1, %p561_p0 }
   0xb   :  { %569 = shalt.err (!%p566_p2)
}
   0xc   :  { %s570_s18 = scalar_lea.vmem %s27_s10, 256  ;;  %p575_p4 = scmp.lt.s32.totalorder %s27_s10, %s27_s10 }
   0xd   :  { %p571_p3 = scmp.ne.s32.totalorder %s27_s10, %s570_s18  ;;  %p576_p5 = scmp.lt.s32.totalorder %s570_s18, %s570_s18 }
   0xf   :  { %p577_p6 = por %p576_p5, %p575_p4 }
  0x11   :  { %p578_p7 = pnand %p577_p6, %p571_p3 }
  0x13   :  { %581 = shalt.err (!%p578_p7)
}
  0x14   :  { %s749_s19 = smov 128   ;;  %s750_s20 = smov 8  }
  0x15   :  { %32 = dma.hbm_to_vmem [thread:$0]  %s987_s0, 256, %s27_s10, [#allocation3], %s749_s19, %s749_s19, %s750_s20  }
  0x16   :  { %s751_s23 = smov [#allocation5]   ;;  %s582_s27 = scalar_lea.hbm %s989_s2, 8192 }
  0x17   :  { %s40_s24 = sshll.u32 %s751_s23, 4  ;;  %p583_p8 = scmp.ne.s32.totalorder %s989_s2, %s582_s27  ;;  %s41_s24 = int_to_ptr.vmem [resolvable:$true] %s40_s24 }
  0x18   :  { %p586_p9 = scmp.lt.u32.totalorder %s582_s27, %s989_s2 }
  0x1a   :  { %p588_p10 = pnand %p586_p9, %p583_p8 }
  0x1c   :  { %591 = shalt.err (!%p588_p10)
}
  0x1d   :  { %s592_s12 = scalar_lea.vmem %s41_s24, 8192  ;;  %p597_p12 = scmp.lt.s32.totalorder %s41_s24, %s41_s24 }
  0x1e   :  { %p593_p11 = scmp.ne.s32.totalorder %s41_s24, %s592_s12  ;;  %p598_p13 = scmp.lt.s32.totalorder %s592_s12, %s592_s12 }
  0x20   :  { %p599_p0 = por %p598_p13, %p597_p12 }
  0x22   :  { %p600_p1 = pnand %p599_p0, %p593_p11 }
  0x24   :  { %603 = shalt.err (!%p600_p1)
}
  0x25   :  { %s752_s0 = smov 512   ;;  %s753_s10 = smov 32  }
  0x26   :  { %46 = dma.hbm_to_vmem [thread:$0]  %s989_s2, 8192, %s41_s24, [#allocation6], %s752_s0, %s752_s0, %s753_s10  }
  0x27   :  { %736 = dma.done.wait [#allocation3], 256  }
  0x28   :  { %737 = vsyncadd [#allocation3], 4294967040 }
  0x29   :  { %738 = dma.done.wait [#allocation6], 8192  }
  0x2a   :  { %739 = vsyncadd [#allocation6], 4294959104  ;;  %v754_v0 = vmov 0.0   ;;  %v58_v1 = vld [vmem:[#allocation5 + $0x8] sm:$0xff]  ;;  %v60_v3 = vld [vmem:[#allocation5 + $0x18] sm:$0xff]  ;;  %s755_s17 = smov [#allocation14]  }
  0x2b   :  { %207 = vmatprep.mubr.f32.mxu0 %v754_v0  ;;  %284 = vmatprep.mubr.f32.mxu1 %v754_v0  ;;  %v62_v2 = vld [vmem:[#allocation5 + $0x28] sm:$0xff]  ;;  %v64_v5 = vld [vmem:[#allocation5 + $0x38] sm:$0xff]  ;;  %v57_v6 = vld [vmem:[#allocation5] sm:$0xff]  ;;  %s430_s18 = sshll.u32 %s755_s17, 4  ;;  %s756_s21 = smov [#allocation8]   ;;  %s854_s18 = int_to_ptr.vmem [resolvable:$true] %s430_s18 }
  0x2c   :  { %v463_v4 = vpack.c.bf16 %v62_v2, %v58_v1  ;;  %v61_v7 = vld [vmem:[#allocation5 + $0x20] sm:$0xff]  ;;  %v495_v8 = vpack.c.bf16 %v64_v5, %v60_v3  ;;  %v59_v10 = vld [vmem:[#allocation5 + $0x10] sm:$0xff]  ;;  %v66_v12 = vld [vmem:[#allocation5 + $0x48] sm:$0xff]  ;;  %s382_s22 = sshll.u32 %s756_s21, 4  ;;  %s757_s23 = smov [#allocation11]   ;;  %s856_s22 = int_to_ptr.vmem [resolvable:$true] %s382_s22 }
  0x2d   :  { %v465_v9 = vpack.c.bf16 %v61_v7, %v57_v6  ;;  %v63_v11 = vld [vmem:[#allocation5 + $0x30] sm:$0xff]  ;;  %v70_v14 = vld [vmem:[#allocation5 + $0x68] sm:$0xff]  ;;  %v68_v15 = vld [vmem:[#allocation5 + $0x58] sm:$0xff]  ;;  %s406_s24 = sshll.u32 %s757_s23, 4  ;;  %s758_s25 = smov [#allocation13]   ;;  %s858_s24 = int_to_ptr.vmem [resolvable:$true] %s406_s24 }
  0x2e   :  { %464 = vmatprep.subr.bf16.mxu0 %v463_v4  ;;  %v497_v13 = vpack.c.bf16 %v63_v11, %v59_v10  ;;  %v72_v16 = vld [vmem:[#allocation5 + $0x78] sm:$0xff]  ;;  %496 = vmatprep.subr.bf16.mxu1 %v495_v8  ;;  %v467_v17 = vpack.c.bf16 %v70_v14, %v66_v12  ;;  %v65_v19 = vld [vmem:[#allocation5 + $0x40] sm:$0xff]  ;;  %v67_v21 = vld [vmem:[#allocation5 + $0x50] sm:$0xff]  ;;  %s418_s26 = sshll.u32 %s758_s25, 4  ;;  %s759_s29 = smov [#allocation10]   ;;  %s864_s26 = int_to_ptr.vmem [resolvable:$true] %s418_s26 }
  0x2f   :  { %466 = vmatpush1.bf16.msra.mxu0 %v465_v9  ;;  %v499_v18 = vpack.c.bf16 %v72_v16, %v68_v15  ;;  %v69_v20 = vld [vmem:[#allocation5 + $0x60] sm:$0xff]  ;;  %v71_v23 = vld [vmem:[#allocation5 + $0x70] sm:$0xff]  ;;  %v74_v24 = vld [vmem:[#allocation5 + $0x88] sm:$0xff]  ;;  %s862_s30 = sshll.u32 %s759_s29, 4  ;;  %p609_p3 = scmp.lt.s32.totalorder %s854_s18, %s854_s18  ;;  %s928_s30 = int_to_ptr.vmem [resolvable:$true] %s862_s30 }
  0x30   :  { %498 = vmatpush1.bf16.msra.mxu1 %v497_v13  ;;  %v469_v22 = vpack.c.bf16 %v69_v20, %v65_v19  ;;  %v78_v25 = vld [vmem:[#allocation5 + $0xa8] sm:$0xff]  ;;  %468 = vmatprep.subr.bf16.mxu0 %v467_v17  ;;  %v501_v26 = vpack.c.bf16 %v71_v23, %v67_v21  ;;  %v76_v28 = vld [vmem:[#allocation5 + $0x98] sm:$0xff]  ;;  %v73_v30 = vld [vmem:[#allocation5 + $0x80] sm:$0xff] }
  0x31   :  { %500 = vmatprep.subr.bf16.mxu1 %v499_v18  ;;  %v471_v27 = vpack.c.bf16 %v78_v25, %v74_v24  ;;  %v80_v29 = vld [vmem:[#allocation5 + $0xb8] sm:$0xff]  ;;  %v77_v32 = vld [vmem:[#allocation5 + $0xa0] sm:$0xff]  ;;  %v75_v33 = vld [vmem:[#allocation5 + $0x90] sm:$0xff] }
  0x32   :  { %v503_v31 = vpack.c.bf16 %v80_v29, %v76_v28  ;;  %v79_v34 = vld [vmem:[#allocation5 + $0xb0] sm:$0xff]  ;;  %v473_v35 = vpack.c.bf16 %v77_v32, %v73_v30  ;;  %v82_v36 = vld [vmem:[#allocation5 + $0xc8] sm:$0xff]  ;;  %v84_v38 = vld [vmem:[#allocation5 + $0xd8] sm:$0xff] }
  0x33   :  { %470 = vmatpush1.bf16.msra.mxu0 %v469_v22  ;;  %v86_v37 = vld [vmem:[#allocation5 + $0xe8] sm:$0xff]  ;;  %v505_v39 = vpack.c.bf16 %v79_v34, %v75_v33  ;;  %v88_v41 = vld [vmem:[#allocation5 + $0xf8] sm:$0xff]  ;;  %v81_v42 = vld [vmem:[#allocation5 + $0xc0] sm:$0xff] }
  0x34   :  { %502 = vmatpush1.bf16.msra.mxu1 %v501_v26  ;;  %472 = vmatprep.subr.bf16.mxu0 %v471_v27  ;;  %v475_v40 = vpack.c.bf16 %v86_v37, %v82_v36  ;;  %v85_v43 = vld [vmem:[#allocation5 + $0xe0] sm:$0xff]  ;;  %v507_v44 = vpack.c.bf16 %v88_v41, %v84_v38  ;;  %v83_v45 = vld [vmem:[#allocation5 + $0xd0] sm:$0xff]  ;;  %v90_v47 = vld [vmem:[#allocation5 + $0x108] sm:$0xff]  ;;  %v123_v36 = vlaneseq }
  0x35   :  { %504 = vmatprep.subr.bf16.mxu1 %v503_v31  ;;  %v87_v46 = vld [vmem:[#allocation5 + $0xf0] sm:$0xff]  ;;  %v94_v48 = vld [vmem:[#allocation5 + $0x128] sm:$0xff]  ;;  %v92_v49 = vld [vmem:[#allocation5 + $0x118] sm:$0xff]  ;;  %v477_v51 = vpack.c.bf16 %v85_v43, %v81_v42 }
  0x36   :  { %v96_v50 = vld [vmem:[#allocation5 + $0x138] sm:$0xff]  ;;  %v509_v52 = vpack.c.bf16 %v87_v46, %v83_v45  ;;  %v479_v53 = vpack.c.bf16 %v94_v48, %v90_v47  ;;  %v89_v54 = vld [vmem:[#allocation5 + $0x100] sm:$0xff]  ;;  %v91_v56 = vld [vmem:[#allocation5 + $0x110] sm:$0xff]  ;;  %v124_v37 = vshrl.u32 %v123_v36, 7 }
  0x37   :  { %474 = vmatpush1.bf16.msra.mxu0 %v473_v35  ;;  %v93_v55 = vld [vmem:[#allocation5 + $0x120] sm:$0xff]  ;;  %v511_v57 = vpack.c.bf16 %v96_v50, %v92_v49  ;;  %v95_v58 = vld [vmem:[#allocation5 + $0x130] sm:$0xff]  ;;  %v98_v59 = vld [vmem:[#allocation5 + $0x148] sm:$0xff] }
  0x38   :  { %506 = vmatpush1.bf16.msra.mxu1 %v505_v39  ;;  %476 = vmatprep.subr.bf16.mxu0 %v475_v40  ;;  %v102_v60 = vld [vmem:[#allocation5 + $0x168] sm:$0xff]  ;;  %v100_v61 = vld [vmem:[#allocation5 + $0x158] sm:$0xff]  ;;  %v481_v63 = vpack.c.bf16 %v93_v55, %v89_v54  ;;  %v513_v1 = vpack.c.bf16 %v95_v58, %v91_v56  ;;  %v97_v3 = vld [vmem:[#allocation5 + $0x140] sm:$0xff]  ;;  %v125_v38 = vsub.s32 0, %v124_v37  ;;  %v133_v40 = vsub.s32 2, %v124_v37 }
  0x39   :  { %508 = vmatprep.subr.bf16.mxu1 %v507_v44  ;;  %v104_v62 = vld [vmem:[#allocation5 + $0x178] sm:$0xff]  ;;  %v483_v2 = vpack.c.bf16 %v102_v60, %v98_v59  ;;  %v101_v4 = vld [vmem:[#allocation5 + $0x160] sm:$0xff]  ;;  %v99_v5 = vld [vmem:[#allocation5 + $0x150] sm:$0xff]  ;;  %v129_v41 = vsub.s32 1, %v124_v37  ;;  %v137_v42 = vsub.s32 3, %v124_v37 }
  0x3a   :  { %v515_v6 = vpack.c.bf16 %v104_v62, %v100_v61  ;;  %v103_v7 = vld [vmem:[#allocation5 + $0x170] sm:$0xff]  ;;  %v106_v8 = vld [vmem:[#allocation5 + $0x188] sm:$0xff]  ;;  %v108_v10 = vld [vmem:[#allocation5 + $0x198] sm:$0xff]  ;;  %v485_v12 = vpack.c.bf16 %v101_v4, %v97_v3 }
  0x3b   :  { %478 = vmatpush1.bf16.msra.mxu0 %v477_v51  ;;  %v110_v9 = vld [vmem:[#allocation5 + $0x1a8] sm:$0xff]  ;;  %v112_v11 = vld [vmem:[#allocation5 + $0x1b8] sm:$0xff]  ;;  %v517_v13 = vpack.c.bf16 %v103_v7, %v99_v5  ;;  %v105_v15 = vld [vmem:[#allocation5 + $0x180] sm:$0xff] }
  0x3c   :  { %510 = vmatpush1.bf16.msra.mxu1 %v509_v52  ;;  %480 = vmatprep.subr.bf16.mxu0 %v479_v53  ;;  %v487_v14 = vpack.c.bf16 %v110_v9, %v106_v8  ;;  %v109_v16 = vld [vmem:[#allocation5 + $0x1a0] sm:$0xff]  ;;  %v107_v17 = vld [vmem:[#allocation5 + $0x190] sm:$0xff]  ;;  %v519_v18 = vpack.c.bf16 %v112_v11, %v108_v10  ;;  %v114_v20 = vld [vmem:[#allocation5 + $0x1c8] sm:$0xff] }
  0x3d   :  { %512 = vmatprep.subr.bf16.mxu1 %v511_v57  ;;  %v111_v19 = vld [vmem:[#allocation5 + $0x1b0] sm:$0xff]  ;;  %v118_v21 = vld [vmem:[#allocation5 + $0x1e8] sm:$0xff]  ;;  %v116_v22 = vld [vmem:[#allocation5 + $0x1d8] sm:$0xff]  ;;  %v489_v24 = vpack.c.bf16 %v109_v16, %v105_v15 }
  0x3e   :  { %v120_v23 = vld [vmem:[#allocation5 + $0x1f8] sm:$0xff]  ;;  %v521_v25 = vpack.c.bf16 %v111_v19, %v107_v17  ;;  %v491_v26 = vpack.c.bf16 %v118_v21, %v114_v20  ;;  %v113_v27 = vld [vmem:[#allocation5 + $0x1c0] sm:$0xff]  ;;  %v115_v30 = vld [vmem:[#allocation5 + $0x1d0] sm:$0xff] }
  0x3f   :  { %482 = vmatpush1.bf16.msra.mxu0 %v481_v63  ;;  %v117_v28 = vld [vmem:[#allocation5 + $0x1e0] sm:$0xff]  ;;  %v523_v29 = vpack.c.bf16 %v120_v23, %v116_v22  ;;  %v119_v31 = vld [vmem:[#allocation5 + $0x1f0] sm:$0xff]  ;;  %v56_v35 = vld [vmem:[#allocation2 + $0x8] sm:$0xff] }
  0x40   :  { %514 = vmatpush1.bf16.msra.mxu1 %v513_v1  ;;  %484 = vmatprep.subr.bf16.mxu0 %v483_v2  ;;  %v493_v32 = vpack.c.bf16 %v117_v28, %v113_v27  ;;  %v525_v33 = vpack.c.bf16 %v119_v31, %v115_v30  ;;  %v55_v34 = vld [vmem:[#allocation2] sm:$0xff] }
  0x41   :  { %516 = vmatprep.subr.bf16.mxu1 %v515_v6  ;;  %v121_v39 = vld [vmem:[%s990_s3] sm:$0xf] }
  0x42   :  { %v126_v43 = vrot.slane %v121_v39, %v125_v38  ;;  %v134_v44 = vrot.slane %v121_v39, %v133_v40  ;;  %v130_v45 = vrot.slane %v121_v39, %v129_v41  ;;  %v138_v46 = vrot.slane %v121_v39, %v137_v42  ;;  %v461_v17 = vld [vmem:[%s988_s1] ss:$0 sm:$0xff]  ;;  %v462_v31 = vld [vmem:[%s988_s1 + $0x1] ss:$0 sm:$0xff]  ;;  %s604_s1 = scalar_lea.vmem %s854_s18, 256 }
  0x43   :  { %486 = vmatpush1.bf16.msra.mxu0 %v485_v12  ;;  %p605_p2 = scmp.ne.s32.totalorder %s854_s18, %s604_s1  ;;  %p610_p4 = scmp.lt.s32.totalorder %s604_s1, %s604_s1 }
  0x44   :  { %518 = vmatpush1.bf16.msra.mxu1 %v517_v13  ;;  %488 = vmatprep.subr.bf16.mxu0 %v487_v14 }
  0x45   :  { %520 = vmatprep.subr.bf16.mxu1 %v519_v18  ;;  %p611_p5 = por %p610_p4, %p609_p3 }
  0x47   :  { %490 = vmatpush1.bf16.msra.mxu0 %v489_v24  ;;  %p612_p6 = pnand %p611_p5, %p605_p2 }
  0x48   :  { %522 = vmatpush1.bf16.msra.mxu1 %v521_v25  ;;  %492 = vmatprep.subr.bf16.mxu0 %v491_v26 }
  0x49   :  { %524 = vmatprep.subr.bf16.mxu1 %v523_v29 }
  0x4b   :  { %494 = vmatpush1.bf16.msra.mxu0 %v493_v32 }
  0x4c   :  { %526 = vmatpush1.bf16.msra.mxu1 %v525_v33 }
  0x4e   :  { %208 = vmatmul.mubr.f32.vlgmr.msra.gmra.mrb[0].mxu0 %v55_v34 }
  0x4f   :  { %285 = vmatmul.mubr.f32.vlgmr.msra.gmra.mrb[0].mxu1 %v55_v34  ;;  %213 = vmatprep.mubr.f32.mxu0 %v754_v0 }
  0x50   :  { %290 = vmatprep.mubr.f32.mxu1 %v754_v0 }
  0x52   :  { %214 = vmatmul.mubr.f32.gmra.mrb[2].mxu0 %v56_v35 }
  0x53   :  { %291 = vmatmul.mubr.f32.gmra.mrb[2].mxu1 %v56_v35 }
 0x121   :  { %v209_v47 = vpop.f32.mrb[0].mxu0 }
 0x122   :  { %v210_v48 = vadd.f32 %v209_v47, %v126_v43  ;;  %v286_v49 = vpop.f32.mrb[0].mxu1  ;;  %v211_v0 = vpop.f32.mrb[1].mxu0 }
 0x123   :  { %v287_v50 = vadd.f32 %v286_v49, %v134_v44  ;;  %v212_v51 = vadd.f32 %v211_v0, %v130_v45  ;;  %v288_v52 = vpop.f32.mrb[1].mxu1 }
 0x124   :  { %v297_v53 = vmul.f32 0.5, %v210_v48  ;;  %v289_v54 = vadd.f32 %v288_v52, %v138_v46 }
 0x125   :  { %v313_v55 = vmul.f32 0.5, %v287_v50  ;;  %v305_v56 = vmul.f32 0.5, %v212_v51  ;;  %v215_v57 = vpop.f32.mrb[2].mxu0 }
 0x126   :  { %540 = vtanh.f32 %v297_v53  ;;  %v321_v58 = vmul.f32 0.5, %v289_v54  ;;  %v216_v59 = vadd.f32 %v215_v57, %v126_v43  ;;  %v292_v60 = vpop.f32.mrb[2].mxu1  ;;  %v217_v61 = vpop.f32.mrb[3].mxu0 }
 0x127   :  { %542 = vtanh.f32 %v313_v55  ;;  %v293_v62 = vadd.f32 %v292_v60, %v134_v44  ;;  %v218_v63 = vadd.f32 %v217_v61, %v130_v45  ;;  %v294_v1 = vpop.f32.mrb[3].mxu1 }
 0x128   :  { %544 = vtanh.f32 %v305_v56  ;;  %v298_v2 = vmul.f32 0.5, %v216_v59  ;;  %v295_v3 = vadd.f32 %v294_v1, %v138_v46 }
 0x129   :  { %546 = vtanh.f32 %v321_v58  ;;  %v314_v4 = vmul.f32 0.5, %v293_v62  ;;  %v306_v5 = vmul.f32 0.5, %v218_v63 }
 0x12a   :  { %548 = vtanh.f32 %v298_v2  ;;  %v322_v6 = vmul.f32 0.5, %v295_v3 }
 0x12b   :  { %550 = vtanh.f32 %v314_v4 }
 0x12c   :  { %552 = vtanh.f32 %v306_v5 }
 0x12d   :  { %554 = vtanh.f32 %v322_v6 }
 0x130   :  { %v541_v7 = vpop.eup %540 }
 0x131   :  { %v543_v8 = vpop.eup %542  ;;  %v301_v9 = vmul.f32 0.5, %v541_v7 }
 0x132   :  { %v545_v10 = vpop.eup %544  ;;  %v317_v11 = vmul.f32 0.5, %v543_v8 }
 0x133   :  { %v547_v12 = vpop.eup %546  ;;  %v303_v13 = vadd.f32 0.5, %v301_v9  ;;  %v309_v14 = vmul.f32 0.5, %v545_v10 }
 0x134   :  { %v549_v15 = vpop.eup %548  ;;  %v319_v16 = vadd.f32 0.5, %v317_v11  ;;  %v325_v18 = vmul.f32 0.5, %v547_v12 }
 0x135   :  { %v551_v19 = vpop.eup %550  ;;  %357 = vst [vmem:[#allocation10] sm:$0xff] %v303_v13  ;;  %v311_v20 = vadd.f32 0.5, %v309_v14  ;;  %v302_v21 = vmul.f32 0.5, %v549_v15 }
 0x136   :  { %v553_v22 = vpop.eup %552  ;;  %v345_v23 = vmul.f32 %v319_v16, %v303_v13  ;;  %363 = vst [vmem:[#allocation14] sm:$0xff] %v319_v16  ;;  %v848_v24 = vadd.f32 0.5, %v325_v18  ;;  %v318_v25 = vmul.f32 0.5, %v551_v19 }
 0x137   :  { %v555_v26 = vpop.eup %554  ;;  %v343_v27 = vmul.f32 %v461_v17, %v311_v20  ;;  %359 = vst [vmem:[#allocation11] sm:$0xff] %v311_v20  ;;  %v304_v28 = vadd.f32 0.5, %v302_v21  ;;  %v310_v29 = vmul.f32 0.5, %v553_v22 }
 0x138   :  { %361 = vst [vmem:[#allocation13] sm:$0xff] %v848_v24  ;;  %v320_v30 = vadd.f32 0.5, %v318_v25  ;;  %v326_v32 = vmul.f32 0.5, %v555_v26 }
 0x139   :  { %358 = vst [vmem:[#allocation10 + $0x8] sm:$0xff] %v304_v28  ;;  %v312_v33 = vadd.f32 0.5, %v310_v29  ;;  %v347_v34 = vadd.f32 %v345_v23, %v343_v27 }
 0x13a   :  { %v346_v35 = vmul.f32 %v320_v30, %v304_v28  ;;  %364 = vst [vmem:[#allocation14 + $0x8] sm:$0xff] %v320_v30  ;;  %v860_v36 = vadd.f32 0.5, %v326_v32 }
 0x13b   :  { %v344_v37 = vmul.f32 %v462_v31, %v312_v33  ;;  %360 = vst [vmem:[#allocation11 + $0x8] sm:$0xff] %v312_v33  ;;  %556 = vtanh.f32 %v347_v34  ;;  %355 = vst [vmem:[#allocation8] sm:$0xff] %v347_v34 }
 0x13c   :  { %615 = shalt.err (!%p612_p6)
}
 0x13d   :  { %s616_s0 = scalar_lea.hbm %s996_s9, 256 }
 0x13e   :  { %p617_p7 = scmp.ne.s32.totalorder %s996_s9, %s616_s0  ;;  %p620_p8 = scmp.lt.u32.totalorder %s616_s0, %s996_s9 }
 0x140   :  { %p622_p9 = pnand %p620_p8, %p617_p7 }
 0x142   :  { %625 = shalt.err (!%p622_p9)
}
 0x143   :  { %436 = dma.vmem_to_hbm [thread:$0]  %s854_s18, 256, %s996_s9, [#allocation15], %s749_s19, %s749_s19, %s750_s20   ;;  %362 = vst [vmem:[#allocation13 + $0x8] sm:$0xff] %v860_v36 }
 0x144   :  { %s626_s16 = scalar_lea.vmem %s858_s24, 256  ;;  %p631_p11 = scmp.lt.s32.totalorder %s858_s24, %s858_s24 }
 0x145   :  { %p627_p10 = scmp.ne.s32.totalorder %s858_s24, %s626_s16  ;;  %p632_p12 = scmp.lt.s32.totalorder %s626_s16, %s626_s16 }
 0x147   :  { %p633_p13 = por %p632_p12, %p631_p11 }
 0x149   :  { %p634_p0 = pnand %p633_p13, %p627_p10 }
 0x14b   :  { %637 = shalt.err (!%p634_p0)
}
 0x14c   :  { %s638_s23 = scalar_lea.hbm %s994_s7, 256 }
 0x14d   :  { %p639_p1 = scmp.ne.s32.totalorder %s994_s7, %s638_s23  ;;  %p642_p2 = scmp.lt.u32.totalorder %s638_s23, %s994_s7 }
 0x14f   :  { %p644_p3 = pnand %p642_p2, %p639_p1 }
 0x151   :  { %647 = shalt.err (!%p644_p3)
}
 0x152   :  { %412 = dma.vmem_to_hbm [thread:$0]  %s858_s24, 256, %s994_s7, [#allocation12], %s749_s19, %s749_s19, %s750_s20   ;;  %v348_v38 = vadd.f32 %v346_v35, %v344_v37 }
 0x153   :  { %s648_s1 = scalar_lea.vmem %s864_s26, 256  ;;  %p653_p5 = scmp.lt.s32.totalorder %s864_s26, %s864_s26 }
 0x154   :  { %p649_p4 = scmp.ne.s32.totalorder %s864_s26, %s648_s1  ;;  %p654_p6 = scmp.lt.s32.totalorder %s648_s1, %s648_s1 }
 0x156   :  { %p655_p7 = por %p654_p6, %p653_p5 }
 0x158   :  { %p656_p8 = pnand %p655_p7, %p649_p4 }
 0x15a   :  { %659 = shalt.err (!%p656_p8)
}
 0x15b   :  { %s660_s0 = scalar_lea.hbm %s995_s8, 256 }
 0x15c   :  { %p661_p9 = scmp.ne.s32.totalorder %s995_s8, %s660_s0  ;;  %p664_p10 = scmp.lt.u32.totalorder %s660_s0, %s995_s8 }
 0x15e   :  { %p666_p11 = pnand %p664_p10, %p661_p9 }
 0x160   :  { %669 = shalt.err (!%p666_p11)
}
 0x161   :  { %424 = dma.vmem_to_hbm [thread:$0]  %s864_s26, 256, %s995_s8, [#allocation12], %s749_s19, %s749_s19, %s750_s20   ;;  %558 = vtanh.f32 %v348_v38  ;;  %356 = vst [vmem:[#allocation8 + $0x8] sm:$0xff] %v348_v38 }
 0x162   :  { %s670_s15 = scalar_lea.vmem %s856_s22, 256  ;;  %p675_p13 = scmp.lt.s32.totalorder %s856_s22, %s856_s22 }
 0x163   :  { %p671_p12 = scmp.ne.s32.totalorder %s856_s22, %s670_s15  ;;  %p676_p0 = scmp.lt.s32.totalorder %s670_s15, %s670_s15 }
 0x165   :  { %p677_p1 = por %p676_p0, %p675_p13 }
 0x167   :  { %p678_p2 = pnand %p677_p1, %p671_p12 }
 0x169   :  { %681 = shalt.err (!%p678_p2)
}
 0x16a   :  { %s682_s17 = scalar_lea.hbm %s992_s5, 256 }
 0x16b   :  { %p683_p3 = scmp.ne.s32.totalorder %s992_s5, %s682_s17  ;;  %p686_p4 = scmp.lt.u32.totalorder %s682_s17, %s992_s5 }
 0x16d   :  { %p688_p5 = pnand %p686_p4, %p683_p3 }
 0x16f   :  { %691 = shalt.err (!%p688_p5)
}
 0x170   :  { %388 = dma.vmem_to_hbm [thread:$0]  %s856_s22, 256, %s992_s5, [#allocation9], %s749_s19, %s749_s19, %s750_s20  }
 0x171   :  { %s692_s28 = scalar_lea.vmem %s928_s30, 256  ;;  %p697_p7 = scmp.lt.s32.totalorder %s928_s30, %s928_s30 }
 0x172   :  { %p693_p6 = scmp.ne.s32.totalorder %s928_s30, %s692_s28  ;;  %p698_p8 = scmp.lt.s32.totalorder %s692_s28, %s692_s28 }
 0x174   :  { %p699_p9 = por %p698_p8, %p697_p7 }
 0x176   :  { %p700_p10 = pnand %p699_p9, %p693_p6 }
 0x178   :  { %703 = shalt.err (!%p700_p10)
}
 0x179   :  { %s704_s29 = scalar_lea.hbm %s993_s6, 256 }
 0x17a   :  { %p705_p11 = scmp.ne.s32.totalorder %s993_s6, %s704_s29  ;;  %p708_p12 = scmp.lt.u32.totalorder %s704_s29, %s993_s6 }
 0x17c   :  { %p710_p13 = pnand %p708_p12, %p705_p11 }
 0x17e   :  { %713 = shalt.err (!%p710_p13)
}
 0x17f   :  { %400 = dma.vmem_to_hbm [thread:$0]  %s928_s30, 256, %s993_s6, [#allocation9], %s749_s19, %s749_s19, %s750_s20   ;;  %v557_v39 = vpop.eup %556 }
 0x180   :  { %v351_v40 = vmul.f32 %v557_v39, %v848_v24  ;;  %s760_s10 = smov [#allocation7]   ;;  %v559_v41 = vpop.eup %558 }
 0x181   :  { %s370_s13 = sshll.u32 %s760_s10, 4  ;;  %v352_v42 = vmul.f32 %v559_v41, %v860_v36  ;;  %s371_s13 = int_to_ptr.vmem [resolvable:$true] %s370_s13 }
 0x182   :  { %353 = vst [vmem:[#allocation7] sm:$0xff] %v351_v40  ;;  %s714_s14 = scalar_lea.vmem %s371_s13, 256  ;;  %p719_p1 = scmp.lt.s32.totalorder %s371_s13, %s371_s13 }
 0x183   :  { %354 = vst [vmem:[#allocation7 + $0x8] sm:$0xff] %v352_v42  ;;  %p715_p0 = scmp.ne.s32.totalorder %s371_s13, %s714_s14  ;;  %p720_p2 = scmp.lt.s32.totalorder %s714_s14, %s714_s14 }
 0x185   :  { %p721_p3 = por %p720_p2, %p719_p1 }
 0x187   :  { %p722_p4 = pnand %p721_p3, %p715_p0 }
 0x189   :  { %725 = shalt.err (!%p722_p4)
}
 0x18a   :  { %s726_s30 = scalar_lea.hbm %s991_s4, 256 }
 0x18b   :  { %p727_p5 = scmp.ne.s32.totalorder %s991_s4, %s726_s30  ;;  %p730_p6 = scmp.lt.u32.totalorder %s726_s30, %s991_s4 }
 0x18d   :  { %p732_p7 = pnand %p730_p6, %p727_p5 }
 0x18f   :  { %735 = shalt.err (!%p732_p7)
}
 0x190   :  { %376 = dma.vmem_to_hbm [thread:$0]  %s371_s13, 256, %s991_s4, [#allocation4], %s749_s19, %s749_s19, %s750_s20  }
 0x191   :  { %740 = dma.done.wait [#allocation4], 256  }
 0x192   :  { %741 = vsyncadd [#allocation4], 4294967040 }
 0x193   :  { %742 = dma.done.wait [#allocation9], 512  }
 0x194   :  { %743 = vsyncadd [#allocation9], 4294966784 }
 0x195   :  { %744 = dma.done.wait [#allocation12], 512  }
 0x196   :  { %745 = vsyncadd [#allocation12], 4294966784 }
 0x197   :  { %746 = dma.done.wait [#allocation15], 256  }
 0x198   :  { %747 = vsyncadd [#allocation15], 4294967040 }
 0x199   :  { %455 = vsyncpa [#allocation3], 1 }
 0x19a   :  { %456 = vsyncpa [#allocation6], 1 }
 0x19b   :  { %457 = vsyncpa [#allocation4], 1 }
 0x19c   :  { %458 = vsyncpa [#allocation9], 1 }
 0x19d   :  { %459 = vsyncpa [#allocation12], 1 }
 0x19e   :  { %460 = vsyncpa [#allocation15], 1 }

</bundles_post_ra>
